<compile_context>
chip_gen: v7x
topology: tpu7x:2x2x1
jax: 0.10.0
libtpu: 0.0.40
codegen_flags: <defaults>
</compile_context>

<pallas_src>
import functools

import jax
import jax.numpy as jnp
from jax import lax
from jax.experimental import pallas as pl
from jax.experimental.pallas import tpu as pltpu

SELU_ALPHA = 1.6732632423543772
SELU_SCALE = 1.0507009873554805
LN_EPS = 1e-5
BN_EPS = 1e-5


# ---------------------------------------------------------------------------
# chip-dependent tiling defaults
# ---------------------------------------------------------------------------
@functools.lru_cache(maxsize=None)
def _max_row_tile():
    # v5e / v6e: 128 MiB VMEM -> 512-row tiles (~85% of HBM roofline).
    # v7x / unknown: 64 MiB VMEM -> stay at 256-row tiles.
    try:
        kind = jax.devices()[0].device_kind.lower()
    except Exception:
        return 256
    return 512 if ("v5" in kind or "v6" in kind) else 256


@functools.lru_cache(maxsize=None)
def _compiler_kwargs():
    # Larger tiles on v5e/v6e need a larger scoped-VMEM budget.
    if _max_row_tile() == 512:
        return {"vmem_limit_bytes": 64 * 1024 * 1024}
    return {}


def _cparams():
    return pltpu.CompilerParams(dimension_semantics=("parallel",),
                                **_compiler_kwargs())


def _row_tile(m):
    t = min(_max_row_tile(), m)
    # keep >= 2 grid steps so both v7x TensorCores get work on "parallel" axes
    if t >= m and m >= 16:
        t = max(8, ((m + 1) // 2 + 7) // 8 * 8)
    return t


def _const_spec(a):
    # grid-invariant operand: full-array block, constant index_map
    nd = a.ndim
    return pl.BlockSpec(a.shape, lambda *_, nd=nd: (0,) * nd)


# ---------------------------------------------------------------------------
# small in-kernel helpers
# ---------------------------------------------------------------------------
def _sigmoid(x):
    # exp + reciprocal both run on the EUP slot (no VALU divide).
    return pl.reciprocal(1.0 + jnp.exp(-x), approx=True)


def _layernorm(x, g, b):
    mu = jnp.mean(x, axis=-1, keepdims=True)
    var = jnp.mean((x - mu) ** 2, axis=-1, keepdims=True)
    return (x - mu) * lax.rsqrt(var + LN_EPS) * g + b


def _mxu(a_f32, w_bf16):
    # weights arrive pre-cast to bf16; activations cast at the MXU edge; f32 acc.
    return jnp.dot(a_f32.astype(jnp.bfloat16), w_bf16,
                   preferred_element_type=jnp.float32)


# ---------------------------------------------------------------------------
# LL linear + BatchNorm2d(1) (eval) + SELU, row-tiled
# ---------------------------------------------------------------------------
def _ll_kernel(x_ref, w_ref, b_ref, o_ref):
    y = _mxu(x_ref[...], w_ref[...]) + b_ref[...]
    # BatchNorm2d(num_features=1), eval mode, default running stats (mean=0, var=1)
    y = y * (1.0 / (1.0 + BN_EPS) ** 0.5)
    y = SELU_SCALE * jnp.where(y > 0, y, SELU_ALPHA * (jnp.exp(y) - 1.0))
    o_ref[...] = y.astype(o_ref.dtype)


def ll_bn_selu(x2d, w_bf16, b_row):
    m, k = x2d.shape
    n_out = w_bf16.shape[1]
    tm = _row_tile(m)
    return pl.pallas_call(
        _ll_kernel,
        grid=(pl.cdiv(m, tm),),
        out_shape=jax.ShapeDtypeStruct((m, n_out), jnp.float32),
        in_specs=[pl.BlockSpec((tm, k), lambda i: (i, 0)),
                  _const_spec(w_bf16), _const_spec(b_row)],
        out_specs=pl.BlockSpec((tm, n_out), lambda i: (i, 0)),
        compiler_params=_cparams(),
    )(x2d, w_bf16, b_row)


# ---------------------------------------------------------------------------
# fused: ff1 half-step + attention pre-LN + merged QKV projection (row-tiled)
#   x_out = x + 0.5 * (W2 @ SiLU(W1 @ LN(x)))
#   qkv   = LN_attn(x_out) @ Wqkv              (to_q / to_kv have no bias)
# ---------------------------------------------------------------------------
def _ffn_qkv_kernel(x_ref, g_ref, b_ref, w1_ref, b1_ref, w2_ref, b2_ref,
                    ag_ref, ab_ref, wqkv_ref, x_out_ref, qkv_out_ref):
    x = x_ref[...]
    h = _layernorm(x, g_ref[...], b_ref[...])
    h = _mxu(h, w1_ref[...]) + b1_ref[...]
    h = h * _sigmoid(h)                                   # SiLU / Swish
    y = _mxu(h, w2_ref[...]) + b2_ref[...]
    xo = x + 0.5 * y                                      # ff1 half-step residual
    x_out_ref[...] = xo.astype(x_out_ref.dtype)
    a = _layernorm(xo, ag_ref[...], ab_ref[...])          # attention pre-LN
    qkv_out_ref[...] = _mxu(a, wqkv_ref[...]).astype(qkv_out_ref.dtype)


def ffn_qkv_block(x2d, p):
    m, d = x2d.shape
    n_qkv = p["attn_qkv_w"].shape[1]
    tm = _row_tile(m)
    args = [x2d,
            p["ff1_ln_g"], p["ff1_ln_b"], p["ff1_w1"], p["ff1_b1"],
            p["ff1_w2"], p["ff1_b2"],
            p["attn_ln_g"], p["attn_ln_b"], p["attn_qkv_w"]]
    in_specs = [pl.BlockSpec((tm, d), lambda i: (i, 0))]
    in_specs += [_const_spec(a) for a in args[1:]]
    return pl.pallas_call(
        _ffn_qkv_kernel,
        grid=(pl.cdiv(m, tm),),
        out_shape=(jax.ShapeDtypeStruct((m, d), jnp.float32),
                   jax.ShapeDtypeStruct((m, n_qkv), jnp.float32)),
        in_specs=in_specs,
        out_specs=(pl.BlockSpec((tm, d), lambda i: (i, 0)),
                   pl.BlockSpec((tm, n_qkv), lambda i: (i, 0))),
        compiler_params=_cparams(),
    )(*args)


# ---------------------------------------------------------------------------
# fused: ff2 half-step + post-LayerNorm (row-tiled)
# ---------------------------------------------------------------------------
def _ffn_post_kernel(x_ref, g_ref, b_ref, w1_ref, b1_ref, w2_ref, b2_ref,
                     pg_ref, pb_ref, o_ref):
    x = x_ref[...]
    h = _layernorm(x, g_ref[...], b_ref[...])
    h = _mxu(h, w1_ref[...]) + b1_ref[...]
    h = h * _sigmoid(h)
    y = _mxu(h, w2_ref[...]) + b2_ref[...]
    y = x + 0.5 * y                                       # ff2 half-step residual
    o_ref[...] = _layernorm(y, pg_ref[...], pb_ref[...]).astype(o_ref.dtype)


def ffn_post_block(x2d, p):
    m, d = x2d.shape
    tm = _row_tile(m)
    args = [x2d,
            p["ff2_ln_g"], p["ff2_ln_b"], p["ff2_w1"], p["ff2_b1"],
            p["ff2_w2"], p["ff2_b2"],
            p["post_ln_g"], p["post_ln_b"]]
    in_specs = [pl.BlockSpec((tm, d), lambda i: (i, 0))]
    in_specs += [_const_spec(a) for a in args[1:]]
    return pl.pallas_call(
        _ffn_post_kernel,
        grid=(pl.cdiv(m, tm),),
        out_shape=jax.ShapeDtypeStruct((m, d), jnp.float32),
        in_specs=in_specs,
        out_specs=pl.BlockSpec((tm, d), lambda i: (i, 0)),
        compiler_params=_cparams(),
    )(*args)


# ---------------------------------------------------------------------------
# fused per-batch kernel:
#   multi-head attention (all heads) + out-projection + residual
#   + Conformer conv module (LN -> 1x1 -> GLU -> depthwise -> BN -> Swish -> 1x1)
#   + residual
# ---------------------------------------------------------------------------
def _attn_conv_kernel(qkv_ref, bias_ref, res_ref, wout_ref, bout_ref,
                      lng_ref, lnb_ref, pw1_ref, pb1_ref, dww_ref, dwb_ref,
                      bng_ref, bnb_ref, bnm_ref, bnv_ref, pw2_ref, pb2_ref,
                      o_ref, pad_ref, *, heads, dh, scale, kernel_size,
                      pad_left, inner):
    n = res_ref.shape[0]
    d_model = heads * dh
    qkv = qkv_ref[...]                                    # (N, 3*D) f32
    bias = bias_ref[...]                                  # (H, N, N) bf16
    wout = wout_ref[...]                                  # (D, D) bf16

    # --- multi-head self-attention, heads folded straight into out-projection --
    acc = jnp.zeros((n, d_model), jnp.float32)
    for h in range(heads):                                # static, unrolled
        q = qkv[:, h * dh:(h + 1) * dh].astype(jnp.bfloat16)
        k = qkv[:, d_model + h * dh:d_model + (h + 1) * dh].astype(jnp.bfloat16)
        v = qkv[:, 2 * d_model + h * dh:2 * d_model + (h + 1) * dh].astype(jnp.bfloat16)
        dots = lax.dot_general(q, k, (((1,), (1,)), ((), ())),
                               preferred_element_type=jnp.float32) * scale
        dots = dots + bias[h].astype(jnp.float32)         # Shaw rel-pos bias
        mx = jnp.max(dots, axis=-1, keepdims=True)
        p = jnp.exp(dots - mx)
        p = p * pl.reciprocal(jnp.sum(p, axis=-1, keepdims=True), approx=True)
        head_out = jnp.dot(p.astype(jnp.bfloat16), v,
                           preferred_element_type=jnp.float32)
        acc = acc + _mxu(head_out, wout[h * dh:(h + 1) * dh, :])
    x = res_ref[...] + acc + bout_ref[...]                # attention residual

    # --- convolution module ---------------------------------------------------
    hcv = _layernorm(x, lng_ref[...], lnb_ref[...])
    y = _mxu(hcv, pw1_ref[...]) + pb1_ref[...]            # 1x1 conv -> 2*inner
    y = y[:, :inner] * _sigmoid(y[:, inner:])             # GLU over channels
    # depthwise "same" conv along time: zero-padded scratch + static-slice taps
    if pad_left > 0:
        pad_ref[0:pad_left, :] = jnp.zeros((pad_left, inner), jnp.float32)
    pad_ref[pad_left:pad_left + n, :] = y
    pad_right = kernel_size - 1 - pad_left
    if pad_right > 0:
        pad_ref[pad_left + n:, :] = jnp.zeros((pad_right, inner), jnp.float32)
    dww = dww_ref[...]                                    # (kernel_size, inner)
    cv = jnp.zeros((n, inner), jnp.float32)
    for j in range(kernel_size):                          # static, unrolled
        cv = cv + pad_ref[j:j + n, :] * dww[j:j + 1, :]
    cv = cv + dwb_ref[...]
    # BatchNorm1d(inner), eval mode, then Swish
    cv = (cv - bnm_ref[...]) * lax.rsqrt(bnv_ref[...] + BN_EPS) * bng_ref[...] + bnb_ref[...]
    cv = cv * _sigmoid(cv)
    y = _mxu(cv, pw2_ref[...]) + pb2_ref[...]             # 1x1 conv -> dim
    o_ref[...] = (x + y).astype(o_ref.dtype)              # conv residual


def attn_conv_block(qkv3, bias, res, p, *, heads, dh, scale, kernel_size):
    B, N, D = res.shape
    inner = p["conv_dw_w"].shape[1]
    pad_left = kernel_size // 2
    args = [qkv3, bias, res,
            p["attn_out_w"], p["attn_out_b"],
            p["conv_ln_g"], p["conv_ln_b"],
            p["conv_pw1_w"], p["conv_pw1_b"],
            p["conv_dw_w"], p["conv_dw_b"],
            p["conv_bn_g"], p["conv_bn_b"], p["conv_bn_m"], p["conv_bn_v"],
            p["conv_pw2_w"], p["conv_pw2_b"]]
    in_specs = [pl.BlockSpec((None, N, 3 * D), lambda b: (b, 0, 0)),
                pl.BlockSpec((None, heads, N, N), lambda b: (b, 0, 0, 0)),
                pl.BlockSpec((None, N, D), lambda b: (b, 0, 0))]
    in_specs += [_const_spec(a) for a in args[3:]]
    return pl.pallas_call(
        functools.partial(_attn_conv_kernel, heads=heads, dh=dh, scale=scale,
                          kernel_size=kernel_size, pad_left=pad_left, inner=inner),
        grid=(B,),
        out_shape=jax.ShapeDtypeStruct((B, N, D), jnp.float32),
        in_specs=in_specs,
        out_specs=pl.BlockSpec((None, N, D), lambda b: (b, 0, 0)),
        scratch_shapes=[pltpu.VMEM((N + kernel_size - 1, inner), jnp.float32)],
        compiler_params=_cparams(),
    )(*args)


# ---------------------------------------------------------------------------
# Shaw relative-position bias (host side, bf16, no (N, N, dh) tensor)
# ---------------------------------------------------------------------------
def rel_pos_bias(q4, rel_emb, max_pos_emb, scale):
    # q4: (B, N, H, dh) f32 view of the QKV output, rel_emb: (2*max+1, dh) f32
    # TODO(synk): move this skew into the attention kernel (q @ rel on the MXU +
    # strided pltpu.roll) to delete the (B, H, N, N) HBM round-trip at long N.
    B, N, H, dh = q4.shape
    d = jnp.arange(-(N - 1), N)
    rel_used = rel_emb[jnp.clip(d, -max_pos_emb, max_pos_emb) + max_pos_emb]  # (2N-1, dh)
    q_rel = jnp.einsum("bnhd,rd->bhnr", q4, rel_used)                          # (B,H,N,2N-1)
    shift = (jnp.arange(N)[:, None] - jnp.arange(N)[None, :]) + (N - 1)
    bias = jnp.take_along_axis(q_rel, jnp.broadcast_to(shift, (B, H, N, N)), axis=-1)
    return (bias * scale).astype(jnp.bfloat16)


# ---------------------------------------------------------------------------
# Conformer block / model composition (glue in plain JAX, compute in kernels)
# ---------------------------------------------------------------------------
def conformer_block(x, p, heads, kernel_size, max_pos_emb):
    B, N, D = x.shape
    dh = D // heads
    scale = dh ** -0.5
    M = B * N
    # ff1 half-step + attention pre-LN + merged QKV projection (one kernel)
    x2, qkv = ffn_qkv_block(x.reshape(M, D), p)
    qkv3 = qkv.reshape(B, N, 3 * D)
    q4 = qkv3[:, :, :D].reshape(B, N, heads, dh)
    bias = rel_pos_bias(q4, p["attn_rel_emb"], max_pos_emb, scale)
    # attention + out-proj + residual + conv module + residual (one kernel,
    # per batch element; lane-dense (N, D) output)
    x = attn_conv_block(qkv3, bias, x2.reshape(B, N, D), p, heads=heads, dh=dh,
                        scale=scale, kernel_size=kernel_size)
    # ff2 half-step + post-LayerNorm (one kernel)
    return ffn_post_block(x.reshape(M, D), p).reshape(B, N, D)


def model_forward(feats, params, *, heads, kernel_size, n_encoders, max_pos_emb):
    # TODO(synk): XLSR_FE feature extraction is stubbed; `feats` is its output.
    B, T, C = feats.shape
    emb = params["ll_w"].shape[1]
    # LL linear + BatchNorm2d(1) (eval) + SELU fused into one tiled kernel
    x = ll_bn_selu(feats.reshape(B * T, C), params["ll_w"], params["ll_b"])
    x = x.reshape(B, T, emb)
    # prepend class token (torch.vstack((class_token, x[i])))
    cls = jnp.broadcast_to(params["class_token"].astype(x.dtype), (B, 1, emb))
    x = jnp.concatenate([cls, x], axis=1)                 # (B, T+1, emb)
    # _get_clones -> all encoder blocks start from identical parameters
    for _ in range(n_encoders):
        x = conformer_block(x, params["block"], heads, kernel_size, max_pos_emb)
    embedding = x[:, 0, :]
    # fc5 head: 2 output lanes / B rows -> plain JAX (a Pallas call is pure overhead)
    out = embedding @ params["fc5_w"] + params["fc5_b"]
    return out, embedding


# ---------------------------------------------------------------------------
# deterministic parameter initialization (shapes follow the PyTorch __init__)
# ---------------------------------------------------------------------------
def init_params(key, feat_in, emb, heads, ff_mult, exp_fac, kernel_size, max_pos_emb):
    dh = emb // heads
    inner = emb * exp_fac
    hidden = emb * ff_mult
    keys = iter(jax.random.split(key, 32))

    def w(shape, scale=0.02):
        return (scale * jax.random.normal(next(keys), shape)).astype(jnp.float32)

    zeros = lambda n: jnp.zeros((n,), jnp.float32)
    ones = lambda n: jnp.ones((n,), jnp.float32)

    block = {}
    for pfx in ("ff1", "ff2"):
        block[pfx + "_ln_g"] = ones(emb); block[pfx + "_ln_b"] = zeros(emb)
        block[pfx + "_w1"] = w((emb, hidden)); block[pfx + "_b1"] = zeros(hidden)
        block[pfx + "_w2"] = w((hidden, emb)); block[pfx + "_b2"] = zeros(emb)
    block["attn_ln_g"] = ones(emb); block["attn_ln_b"] = zeros(emb)
    # merged [to_q | to_kv] projection, both bias-free in the original module
    block["attn_qkv_w"] = w((emb, 3 * emb))
    block["attn_out_w"] = w((emb, emb)); block["attn_out_b"] = zeros(emb)
    block["attn_rel_emb"] = w((2 * max_pos_emb + 1, dh))
    block["conv_ln_g"] = ones(emb); block["conv_ln_b"] = zeros(emb)
    block["conv_pw1_w"] = w((emb, 2 * inner)); block["conv_pw1_b"] = zeros(2 * inner)
    block["conv_dw_w"] = w((kernel_size, inner)); block["conv_dw_b"] = zeros(inner)
    block["conv_bn_g"] = ones(inner); block["conv_bn_b"] = zeros(inner)
    block["conv_bn_m"] = zeros(inner); block["conv_bn_v"] = ones(inner)
    block["conv_pw2_w"] = w((inner, emb)); block["conv_pw2_b"] = zeros(emb)
    block["post_ln_g"] = ones(emb); block["post_ln_b"] = zeros(emb)

    return {
        "ll_w": w((feat_in, emb)), "ll_b": zeros(emb),
        "class_token": jax.random.uniform(next(keys), (1, emb), jnp.float32),
        "fc5_w": w((emb, 2)), "fc5_b": zeros(2),
        "block": block,
    }


# ---------------------------------------------------------------------------
# one-time inference packing: matmul weights -> bf16 (halves DMA / VMEM bytes),
# 1-D vectors -> (1, n) rows (TPU-friendly broadcast layout).
# ---------------------------------------------------------------------------
_BF16_KEYS = ("ll_w", "ff1_w1", "ff1_w2", "ff2_w1", "ff2_w2",
              "attn_qkv_w", "attn_out_w", "conv_pw1_w", "conv_pw2_w")


def prepare_params(params):
    def prep(d):
        out = {}
        for k, v in d.items():
            if isinstance(v, dict):
                out[k] = prep(v)
            elif k in _BF16_KEYS:
                out[k] = v.astype(jnp.bfloat16)
            elif v.ndim == 1:
                out[k] = v.reshape(1, -1)
            else:
                out[k] = v
        return out
    return prep(params)


if __name__ == "__main__":
    B, T = 2, 15          # T + 1 = 16 time steps after the class token
    FEAT_IN = 64          # small stand-in for the 1024-dim XLSR features
    EMB, HEADS = 32, 4
    FF_MULT, EXP_FAC = 4, 2
    KERNEL_SIZE = 7       # small stand-in for the default 31 (same odd-kernel code path)
    N_ENCODERS = 2
    MAX_POS_EMB = 512

    key = jax.random.PRNGKey(0)
    pkey, xkey = jax.random.split(key)
    params = init_params(pkey, FEAT_IN, EMB, HEADS, FF_MULT, EXP_FAC,
                         KERNEL_SIZE, MAX_POS_EMB)
    params = prepare_params(params)
    feats = jax.random.normal(xkey, (B, T, FEAT_IN), jnp.float32)

    fwd = jax.jit(functools.partial(model_forward, heads=HEADS,
                                    kernel_size=KERNEL_SIZE,
                                    n_encoders=N_ENCODERS,
                                    max_pos_emb=MAX_POS_EMB))
    out, embedding = fwd(feats, params)
    jax.block_until_ready((out, embedding))
    assert out.shape == (B, 2) and embedding.shape == (B, EMB)
    assert bool(jnp.all(jnp.isfinite(out))) and bool(jnp.all(jnp.isfinite(embedding)))
    print("KERNEL_OK")
</pallas_src>

<mosaic_0001>
module attributes {stable_mosaic.version = 11 : i64} {
  func.func private @main(%arg0: i32) attributes {dimension_semantics = [#tpu.dimension_semantics<core_parallel>], iteration_bounds = array<i64: 2>, tpu.core_type = #tpu.core_type<sc_scalar_subcore>, window_params = []} {
    return
  }
}

module attributes {stable_mosaic.version = 11 : i64} {
  func.func private @main(%arg0: i32) attributes {dimension_semantics = [#tpu.dimension_semantics<core_parallel>], iteration_bounds = array<i64: 2>, tpu.core_type = #tpu.core_type<sc_scalar_subcore>, window_params = []} {
    return
  }
}

module attributes {stable_mosaic.version = 11 : i64} {
  func.func @_ll_kernel(%arg0: i32, %arg1: memref<16x64xf32, #tpu.memory_space<vmem>>, %arg2: memref<64x32xbf16, #tpu.memory_space<vmem>>, %arg3: memref<1x32xf32, #tpu.memory_space<vmem>>, %arg4: memref<16x32xf32, #tpu.memory_space<vmem>>) attributes {dimension_semantics = [#tpu.dimension_semantics<parallel>], iteration_bounds = array<i64: 2>, scalar_prefetch = 0 : i64, scratch_operands = 0 : i64, tpu.core_type = #tpu.core_type<tc>, window_params = [{transform_indices = @transform_0, window_bounds = array<i64: 16, 64>}, {pipeline_mode = #tpu.pipeline_mode<synchronous>, transform_indices = @transform_1, window_bounds = array<i64: 64, 32>}, {pipeline_mode = #tpu.pipeline_mode<synchronous>, transform_indices = @transform_2, window_bounds = array<i64: 1, 32>}, {transform_indices = @transform_3, window_bounds = array<i64: 16, 32>}]} {
    %c0 = arith.constant 0 : index
    %c0_0 = arith.constant 0 : index
    %0 = vector.load %arg1[%c0, %c0_0] : memref<16x64xf32, #tpu.memory_space<vmem>>, vector<16x64xf32>
    %c0_1 = arith.constant 0 : index
    %c0_2 = arith.constant 0 : index
    %1 = vector.load %arg2[%c0_1, %c0_2] : memref<64x32xbf16, #tpu.memory_space<vmem>>, vector<64x32xbf16>
    %2 = arith.truncf %0 : vector<16x64xf32> to vector<16x64xbf16>
    %cst = arith.constant dense<0.000000e+00> : vector<16x32xf32>
    %3 = tpu.matmul %2, %1, %cst {dimension_numbers = #tpu.dot_dimension_numbers<[1], [0], [0], [1], [0, 0, 1, 1], [], []>} : vector<16x64xbf16>, vector<64x32xbf16>, vector<16x32xf32> -> vector<16x32xf32>
    %c0_3 = arith.constant 0 : index
    %c0_4 = arith.constant 0 : index
    %4 = vector.load %arg3[%c0_3, %c0_4] : memref<1x32xf32, #tpu.memory_space<vmem>>, vector<1x32xf32>
    %5 = vector.broadcast %4 : vector<1x32xf32> to vector<16x32xf32>
    %6 = arith.addf %3, %5 : vector<16x32xf32>
    %cst_5 = arith.constant 0.999994993 : f32
    %7 = vector.broadcast %cst_5 : f32 to vector<16x32xf32>
    %8 = arith.mulf %6, %7 : vector<16x32xf32>
    %cst_6 = arith.constant 0.000000e+00 : f32
    %9 = vector.broadcast %cst_6 : f32 to vector<16x32xf32>
    %10 = arith.cmpf ogt, %8, %9 : vector<16x32xf32>
    %11 = math.exp %8 : vector<16x32xf32>
    %cst_7 = arith.constant 1.000000e+00 : f32
    %12 = vector.broadcast %cst_7 : f32 to vector<16x32xf32>
    %13 = arith.subf %11, %12 : vector<16x32xf32>
    %cst_8 = arith.constant 1.67326319 : f32
    %14 = vector.broadcast %cst_8 : f32 to vector<16x32xf32>
    %15 = arith.mulf %14, %13 : vector<16x32xf32>
    %16 = arith.select %10, %8, %15 : vector<16x32xi1>, vector<16x32xf32>
    %cst_9 = arith.constant 1.05070102 : f32
    %17 = vector.broadcast %cst_9 : f32 to vector<16x32xf32>
    %18 = arith.mulf %17, %16 : vector<16x32xf32>
    %c0_10 = arith.constant 0 : index
    %c0_11 = arith.constant 0 : index
    %19 = vector.load %arg4[%c0_10, %c0_11] : memref<16x32xf32, #tpu.memory_space<vmem>>, vector<16x32xf32>
    tpu.vector_store %arg4[%c0_10, %c0_11], %18 {strides = array<i32>} : memref<16x32xf32, #tpu.memory_space<vmem>>, vector<16x32xf32>,
    return
  }
  func.func @transform_0(%arg0: i32) -> (i32, i32) {
    %c0_i32 = arith.constant 0 : i32
    %c0_i32_0 = arith.constant 0 : i32
    return %arg0, %c0_i32 : i32, i32
  }
  func.func @transform_1(%arg0: i32) -> (i32, i32) {
    %c0_i32 = arith.constant 0 : i32
    %c0_i32_0 = arith.constant 0 : i32
    %c0_i32_1 = arith.constant 0 : i32
    return %c0_i32, %c0_i32_0 : i32, i32
  }
  func.func @transform_2(%arg0: i32) -> (i32, i32) {
    %c0_i32 = arith.constant 0 : i32
    %c0_i32_0 = arith.constant 0 : i32
    %c0_i32_1 = arith.constant 0 : i32
    return %c0_i32, %c0_i32_0 : i32, i32
  }
  func.func @transform_3(%arg0: i32) -> (i32, i32) {
    %c0_i32 = arith.constant 0 : i32
    %c0_i32_0 = arith.constant 0 : i32
    return %arg0, %c0_i32 : i32, i32
  }
}

module attributes {stable_mosaic.version = 11 : i64} {
  func.func @_ffn_qkv_kernel(%arg0: i32, %arg1: memref<16x32xf32, #tpu.memory_space<vmem>>, %arg2: memref<1x32xf32, #tpu.memory_space<vmem>>, %arg3: memref<1x32xf32, #tpu.memory_space<vmem>>, %arg4: memref<32x128xbf16, #tpu.memory_space<vmem>>, %arg5: memref<1x128xf32, #tpu.memory_space<vmem>>, %arg6: memref<128x32xbf16, #tpu.memory_space<vmem>>, %arg7: memref<1x32xf32, #tpu.memory_space<vmem>>, %arg8: memref<1x32xf32, #tpu.memory_space<vmem>>, %arg9: memref<1x32xf32, #tpu.memory_space<vmem>>, %arg10: memref<32x96xbf16, #tpu.memory_space<vmem>>, %arg11: memref<16x32xf32, #tpu.memory_space<vmem>>, %arg12: memref<16x96xf32, #tpu.memory_space<vmem>>) attributes {dimension_semantics = [#tpu.dimension_semantics<parallel>], iteration_bounds = array<i64: 2>, scalar_prefetch = 0 : i64, scratch_operands = 0 : i64, tpu.core_type = #tpu.core_type<tc>, window_params = [{transform_indices = @transform_0, window_bounds = array<i64: 16, 32>}, {pipeline_mode = #tpu.pipeline_mode<synchronous>, transform_indices = @transform_1, window_bounds = array<i64: 1, 32>}, {pipeline_mode = #tpu.pipeline_mode<synchronous>, transform_indices = @transform_2, window_bounds = array<i64: 1, 32>}, {pipeline_mode = #tpu.pipeline_mode<synchronous>, transform_indices = @transform_3, window_bounds = array<i64: 32, 128>}, {pipeline_mode = #tpu.pipeline_mode<synchronous>, transform_indices = @transform_4, window_bounds = array<i64: 1, 128>}, {pipeline_mode = #tpu.pipeline_mode<synchronous>, transform_indices = @transform_5, window_bounds = array<i64: 128, 32>}, {pipeline_mode = #tpu.pipeline_mode<synchronous>, transform_indices = @transform_6, window_bounds = array<i64: 1, 32>}, {pipeline_mode = #tpu.pipeline_mode<synchronous>, transform_indices = @transform_7, window_bounds = array<i64: 1, 32>}, {pipeline_mode = #tpu.pipeline_mode<synchronous>, transform_indices = @transform_8, window_bounds = array<i64: 1, 32>}, {pipeline_mode = #tpu.pipeline_mode<synchronous>, transform_indices = @transform_9, window_bounds = array<i64: 32, 96>}, {transform_indices = @transform_10, window_bounds = array<i64: 16, 32>}, {transform_indices = @transform_11, window_bounds = array<i64: 16, 96>}]} {
    %c0 = arith.constant 0 : index
    %c0_0 = arith.constant 0 : index
    %0 = vector.load %arg1[%c0, %c0_0] : memref<16x32xf32, #tpu.memory_space<vmem>>, vector<16x32xf32>
    %c0_1 = arith.constant 0 : index
    %c0_2 = arith.constant 0 : index
    %1 = vector.load %arg2[%c0_1, %c0_2] : memref<1x32xf32, #tpu.memory_space<vmem>>, vector<1x32xf32>
    %c0_3 = arith.constant 0 : index
    %c0_4 = arith.constant 0 : index
    %2 = vector.load %arg3[%c0_3, %c0_4] : memref<1x32xf32, #tpu.memory_space<vmem>>, vector<1x32xf32>
    %cst = arith.constant dense<0.000000e+00> : vector<16xf32>
    %3 = vector.multi_reduction <add>, %0, %cst [1] : vector<16x32xf32> to vector<16xf32>
    %4 = vector.shape_cast %3 : vector<16xf32> to vector<16x1xf32>
    %cst_5 = arith.constant 3.200000e+01 : f32
    %5 = vector.broadcast %cst_5 : f32 to vector<16x1xf32>
    %6 = arith.divf %4, %5 : vector<16x1xf32>
    %7 = vector.broadcast %6 : vector<16x1xf32> to vector<16x32xf32>
    %8 = arith.subf %0, %7 : vector<16x32xf32>
    %9 = arith.mulf %8, %8 : vector<16x32xf32>
    %cst_6 = arith.constant dense<0.000000e+00> : vector<16xf32>
    %10 = vector.multi_reduction <add>, %9, %cst_6 [1] : vector<16x32xf32> to vector<16xf32>
    %11 = vector.shape_cast %10 : vector<16xf32> to vector<16x1xf32>
    %cst_7 = arith.constant 3.200000e+01 : f32
    %12 = vector.broadcast %cst_7 : f32 to vector<16x1xf32>
    %13 = arith.divf %11, %12 : vector<16x1xf32>
    %14 = vector.broadcast %6 : vector<16x1xf32> to vector<16x32xf32>
    %15 = arith.subf %0, %14 : vector<16x32xf32>
    %cst_8 = arith.constant 9.99999974E-6 : f32
    %16 = vector.broadcast %cst_8 : f32 to vector<16x1xf32>
    %17 = arith.addf %13, %16 : vector<16x1xf32>
    %18 = math.rsqrt %17 : vector<16x1xf32>
    %19 = vector.broadcast %18 : vector<16x1xf32> to vector<16x32xf32>
    %20 = arith.mulf %15, %19 : vector<16x32xf32>
    %21 = vector.broadcast %1 : vector<1x32xf32> to vector<16x32xf32>
    %22 = arith.mulf %20, %21 : vector<16x32xf32>
    %23 = vector.broadcast %2 : vector<1x32xf32> to vector<16x32xf32>
    %24 = arith.addf %22, %23 : vector<16x32xf32>
    %c0_9 = arith.constant 0 : index
    %c0_10 = arith.constant 0 : index
    %25 = vector.load %arg4[%c0_9, %c0_10] : memref<32x128xbf16, #tpu.memory_space<vmem>>, vector<32x128xbf16>
    %26 = arith.truncf %24 : vector<16x32xf32> to vector<16x32xbf16>
    %cst_11 = arith.constant dense<0.000000e+00> : vector<16x128xf32>
    %27 = tpu.matmul %26, %25, %cst_11 {dimension_numbers = #tpu.dot_dimension_numbers<[1], [0], [0], [1], [0, 0, 1, 1], [], []>} : vector<16x32xbf16>, vector<32x128xbf16>, vector<16x128xf32> -> vector<16x128xf32>
    %c0_12 = arith.constant 0 : index
    %c0_13 = arith.constant 0 : index
    %28 = vector.load %arg5[%c0_12, %c0_13] : memref<1x128xf32, #tpu.memory_space<vmem>>, vector<1x128xf32>
    %29 = vector.broadcast %28 : vector<1x128xf32> to vector<16x128xf32>
    %30 = arith.addf %27, %29 : vector<16x128xf32>
    %cst_14 = arith.constant 0.000000e+00 : f32
    %31 = vector.broadcast %cst_14 : f32 to vector<16x128xf32>
    %32 = arith.subf %31, %30 : vector<16x128xf32>
    %33 = math.exp %32 : vector<16x128xf32>
    %cst_15 = arith.constant 1.000000e+00 : f32
    %34 = vector.broadcast %cst_15 : f32 to vector<16x128xf32>
    %35 = arith.addf %34, %33 : vector<16x128xf32>
    %36 = tpu.reciprocal %35 {approx = true} : vector<16x128xf32> -> vector<16x128xf32>
    %37 = arith.mulf %30, %36 : vector<16x128xf32>
    %c0_16 = arith.constant 0 : index
    %c0_17 = arith.constant 0 : index
    %38 = vector.load %arg6[%c0_16, %c0_17] : memref<128x32xbf16, #tpu.memory_space<vmem>>, vector<128x32xbf16>
    %39 = arith.truncf %37 : vector<16x128xf32> to vector<16x128xbf16>
    %cst_18 = arith.constant dense<0.000000e+00> : vector<16x32xf32>
    %40 = tpu.matmul %39, %38, %cst_18 {dimension_numbers = #tpu.dot_dimension_numbers<[1], [0], [0], [1], [0, 0, 1, 1], [], []>} : vector<16x128xbf16>, vector<128x32xbf16>, vector<16x32xf32> -> vector<16x32xf32>
    %c0_19 = arith.constant 0 : index
    %c0_20 = arith.constant 0 : index
    %41 = vector.load %arg7[%c0_19, %c0_20] : memref<1x32xf32, #tpu.memory_space<vmem>>, vector<1x32xf32>
    %42 = vector.broadcast %41 : vector<1x32xf32> to vector<16x32xf32>
    %43 = arith.addf %40, %42 : vector<16x32xf32>
    %cst_21 = arith.constant 5.000000e-01 : f32
    %44 = vector.broadcast %cst_21 : f32 to vector<16x32xf32>
    %45 = arith.mulf %44, %43 : vector<16x32xf32>
    %46 = arith.addf %0, %45 : vector<16x32xf32>
    %c0_22 = arith.constant 0 : index
    %c0_23 = arith.constant 0 : index
    %47 = vector.load %arg11[%c0_22, %c0_23] : memref<16x32xf32, #tpu.memory_space<vmem>>, vector<16x32xf32>
    tpu.vector_store %arg11[%c0_22, %c0_23], %46 {strides = array<i32>} : memref<16x32xf32, #tpu.memory_space<vmem>>, vector<16x32xf32>,
    %c0_24 = arith.constant 0 : index
    %c0_25 = arith.constant 0 : index
    %48 = vector.load %arg8[%c0_24, %c0_25] : memref<1x32xf32, #tpu.memory_space<vmem>>, vector<1x32xf32>
    %c0_26 = arith.constant 0 : index
    %c0_27 = arith.constant 0 : index
    %49 = vector.load %arg9[%c0_26, %c0_27] : memref<1x32xf32, #tpu.memory_space<vmem>>, vector<1x32xf32>
    %cst_28 = arith.constant dense<0.000000e+00> : vector<16xf32>
    %50 = vector.multi_reduction <add>, %46, %cst_28 [1] : vector<16x32xf32> to vector<16xf32>
    %51 = vector.shape_cast %50 : vector<16xf32> to vector<16x1xf32>
    %cst_29 = arith.constant 3.200000e+01 : f32
    %52 = vector.broadcast %cst_29 : f32 to vector<16x1xf32>
    %53 = arith.divf %51, %52 : vector<16x1xf32>
    %54 = vector.broadcast %53 : vector<16x1xf32> to vector<16x32xf32>
    %55 = arith.subf %46, %54 : vector<16x32xf32>
    %56 = arith.mulf %55, %55 : vector<16x32xf32>
    %cst_30 = arith.constant dense<0.000000e+00> : vector<16xf32>
    %57 = vector.multi_reduction <add>, %56, %cst_30 [1] : vector<16x32xf32> to vector<16xf32>
    %58 = vector.shape_cast %57 : vector<16xf32> to vector<16x1xf32>
    %cst_31 = arith.constant 3.200000e+01 : f32
    %59 = vector.broadcast %cst_31 : f32 to vector<16x1xf32>
    %60 = arith.divf %58, %59 : vector<16x1xf32>
    %61 = vector.broadcast %53 : vector<16x1xf32> to vector<16x32xf32>
    %62 = arith.subf %46, %61 : vector<16x32xf32>
    %cst_32 = arith.constant 9.99999974E-6 : f32
    %63 = vector.broadcast %cst_32 : f32 to vector<16x1xf32>
    %64 = arith.addf %60, %63 : vector<16x1xf32>
    %65 = math.rsqrt %64 : vector<16x1xf32>
    %66 = vector.broadcast %65 : vector<16x1xf32> to vector<16x32xf32>
    %67 = arith.mulf %62, %66 : vector<16x32xf32>
    %68 = vector.broadcast %48 : vector<1x32xf32> to vector<16x32xf32>
    %69 = arith.mulf %67, %68 : vector<16x32xf32>
    %70 = vector.broadcast %49 : vector<1x32xf32> to vector<16x32xf32>
    %71 = arith.addf %69, %70 : vector<16x32xf32>
    %c0_33 = arith.constant 0 : index
    %c0_34 = arith.constant 0 : index
    %72 = vector.load %arg10[%c0_33, %c0_34] : memref<32x96xbf16, #tpu.memory_space<vmem>>, vector<32x96xbf16>
    %73 = arith.truncf %71 : vector<16x32xf32> to vector<16x32xbf16>
    %cst_35 = arith.constant dense<0.000000e+00> : vector<16x96xf32>
    %74 = tpu.matmul %73, %72, %cst_35 {dimension_numbers = #tpu.dot_dimension_numbers<[1], [0], [0], [1], [0, 0, 1, 1], [], []>} : vector<16x32xbf16>, vector<32x96xbf16>, vector<16x96xf32> -> vector<16x96xf32>
    %c0_36 = arith.constant 0 : index
    %c0_37 = arith.constant 0 : index
    %75 = vector.load %arg12[%c0_36, %c0_37] : memref<16x96xf32, #tpu.memory_space<vmem>>, vector<16x96xf32>
    tpu.vector_store %arg12[%c0_36, %c0_37], %74 {strides = array<i32>} : memref<16x96xf32, #tpu.memory_space<vmem>>, vector<16x96xf32>,
    return
  }
  func.func @transform_0(%arg0: i32) -> (i32, i32) {
    %c0_i32 = arith.constant 0 : i32
    %c0_i32_0 = arith.constant 0 : i32
    return %arg0, %c0_i32 : i32, i32
  }
  func.func @transform_1(%arg0: i32) -> (i32, i32) {
    %c0_i32 = arith.constant 0 : i32
    %c0_i32_0 = arith.constant 0 : i32
    %c0_i32_1 = arith.constant 0 : i32
    return %c0_i32, %c0_i32_0 : i32, i32
  }
  func.func @transform_2(%arg0: i32) -> (i32, i32) {
    %c0_i32 = arith.constant 0 : i32
    %c0_i32_0 = arith.constant 0 : i32
    %c0_i32_1 = arith.constant 0 : i32
    return %c0_i32, %c0_i32_0 : i32, i32
  }
  func.func @transform_3(%arg0: i32) -> (i32, i32) {
    %c0_i32 = arith.constant 0 : i32
    %c0_i32_0 = arith.constant 0 : i32
    %c0_i32_1 = arith.constant 0 : i32
    return %c0_i32, %c0_i32_0 : i32, i32
  }
  func.func @transform_4(%arg0: i32) -> (i32, i32) {
    %c0_i32 = arith.constant 0 : i32
    %c0_i32_0 = arith.constant 0 : i32
    %c0_i32_1 = arith.constant 0 : i32
    return %c0_i32, %c0_i32_0 : i32, i32
  }
  func.func @transform_5(%arg0: i32) -> (i32, i32) {
    %c0_i32 = arith.constant 0 : i32
    %c0_i32_0 = arith.constant 0 : i32
    %c0_i32_1 = arith.constant 0 : i32
    return %c0_i32, %c0_i32_0 : i32, i32
  }
  func.func @transform_6(%arg0: i32) -> (i32, i32) {
    %c0_i32 = arith.constant 0 : i32
    %c0_i32_0 = arith.constant 0 : i32
    %c0_i32_1 = arith.constant 0 : i32
    return %c0_i32, %c0_i32_0 : i32, i32
  }
  func.func @transform_7(%arg0: i32) -> (i32, i32) {
    %c0_i32 = arith.constant 0 : i32
    %c0_i32_0 = arith.constant 0 : i32
    %c0_i32_1 = arith.constant 0 : i32
    return %c0_i32, %c0_i32_0 : i32, i32
  }
  func.func @transform_8(%arg0: i32) -> (i32, i32) {
    %c0_i32 = arith.constant 0 : i32
    %c0_i32_0 = arith.constant 0 : i32
    %c0_i32_1 = arith.constant 0 : i32
    return %c0_i32, %c0_i32_0 : i32, i32
  }
  func.func @transform_9(%arg0: i32) -> (i32, i32) {
    %c0_i32 = arith.constant 0 : i32
    %c0_i32_0 = arith.constant 0 : i32
    %c0_i32_1 = arith.constant 0 : i32
    return %c0_i32, %c0_i32_0 : i32, i32
  }
  func.func @transform_10(%arg0: i32) -> (i32, i32) {
    %c0_i32 = arith.constant 0 : i32
    %c0_i32_0 = arith.constant 0 : i32
    return %arg0, %c0_i32 : i32, i32
  }
  func.func @transform_11(%arg0: i32) -> (i32, i32) {
    %c0_i32 = arith.constant 0 : i32
    %c0_i32_0 = arith.constant 0 : i32
    return %arg0, %c0_i32 : i32, i32
  }
}

module attributes {stable_mosaic.version = 11 : i64} {
  func.func @_attn_conv_kernel(%arg0: i32, %arg1: memref<1x16x96xf32, #tpu.memory_space<vmem>>, %arg2: memref<1x4x16x16xbf16, #tpu.memory_space<vmem>>, %arg3: memref<1x16x32xf32, #tpu.memory_space<vmem>>, %arg4: memref<32x32xbf16, #tpu.memory_space<vmem>>, %arg5: memref<1x32xf32, #tpu.memory_space<vmem>>, %arg6: memref<1x32xf32, #tpu.memory_space<vmem>>, %arg7: memref<1x32xf32, #tpu.memory_space<vmem>>, %arg8: memref<32x128xbf16, #tpu.memory_space<vmem>>, %arg9: memref<1x128xf32, #tpu.memory_space<vmem>>, %arg10: memref<7x64xf32, #tpu.memory_space<vmem>>, %arg11: memref<1x64xf32, #tpu.memory_space<vmem>>, %arg12: memref<1x64xf32, #tpu.memory_space<vmem>>, %arg13: memref<1x64xf32, #tpu.memory_space<vmem>>, %arg14: memref<1x64xf32, #tpu.memory_space<vmem>>, %arg15: memref<1x64xf32, #tpu.memory_space<vmem>>, %arg16: memref<64x32xbf16, #tpu.memory_space<vmem>>, %arg17: memref<1x32xf32, #tpu.memory_space<vmem>>, %arg18: memref<1x16x32xf32, #tpu.memory_space<vmem>>, %arg19: memref<22x64xf32, #tpu.memory_space<vmem>>) attributes {dimension_semantics = [#tpu.dimension_semantics<parallel>], iteration_bounds = array<i64: 2>, scalar_prefetch = 0 : i64, scratch_operands = 1 : i64, tpu.core_type = #tpu.core_type<tc>, window_params = [{transform_indices = @transform_0, window_bounds = array<i64: 1, 16, 96>}, {transform_indices = @transform_1, window_bounds = array<i64: 1, 4, 16, 16>}, {transform_indices = @transform_2, window_bounds = array<i64: 1, 16, 32>}, {pipeline_mode = #tpu.pipeline_mode<synchronous>, transform_indices = @transform_3, window_bounds = array<i64: 32, 32>}, {pipeline_mode = #tpu.pipeline_mode<synchronous>, transform_indices = @transform_4, window_bounds = array<i64: 1, 32>}, {pipeline_mode = #tpu.pipeline_mode<synchronous>, transform_indices = @transform_5, window_bounds = array<i64: 1, 32>}, {pipeline_mode = #tpu.pipeline_mode<synchronous>, transform_indices = @transform_6, window_bounds = array<i64: 1, 32>}, {pipeline_mode = #tpu.pipeline_mode<synchronous>, transform_indices = @transform_7, window_bounds = array<i64: 32, 128>}, {pipeline_mode = #tpu.pipeline_mode<synchronous>, transform_indices = @transform_8, window_bounds = array<i64: 1, 128>}, {pipeline_mode = #tpu.pipeline_mode<synchronous>, transform_indices = @transform_9, window_bounds = array<i64: 7, 64>}, {pipeline_mode = #tpu.pipeline_mode<synchronous>, transform_indices = @transform_10, window_bounds = array<i64: 1, 64>}, {pipeline_mode = #tpu.pipeline_mode<synchronous>, transform_indices = @transform_11, window_bounds = array<i64: 1, 64>}, {pipeline_mode = #tpu.pipeline_mode<synchronous>, transform_indices = @transform_12, window_bounds = array<i64: 1, 64>}, {pipeline_mode = #tpu.pipeline_mode<synchronous>, transform_indices = @transform_13, window_bounds = array<i64: 1, 64>}, {pipeline_mode = #tpu.pipeline_mode<synchronous>, transform_indices = @transform_14, window_bounds = array<i64: 1, 64>}, {pipeline_mode = #tpu.pipeline_mode<synchronous>, transform_indices = @transform_15, window_bounds = array<i64: 64, 32>}, {pipeline_mode = #tpu.pipeline_mode<synchronous>, transform_indices = @transform_16, window_bounds = array<i64: 1, 32>}, {transform_indices = @transform_17, window_bounds = array<i64: 1, 16, 32>}]} {
    %c0 = arith.constant 0 : index
    %c0_0 = arith.constant 0 : index
    %c0_1 = arith.constant 0 : index
    %0 = vector.load %arg1[%c0, %c0_0, %c0_1] : memref<1x16x96xf32, #tpu.memory_space<vmem>>, vector<1x16x96xf32>
    %1 = vector.shape_cast %0 : vector<1x16x96xf32> to vector<16x96xf32>
    %c0_2 = arith.constant 0 : index
    %c0_3 = arith.constant 0 : index
    %c0_4 = arith.constant 0 : index
    %c0_5 = arith.constant 0 : index
    %2 = vector.load %arg2[%c0_2, %c0_3, %c0_4, %c0_5] : memref<1x4x16x16xbf16, #tpu.memory_space<vmem>>, vector<1x4x16x16xbf16>
    %3 = vector.shape_cast %2 : vector<1x4x16x16xbf16> to vector<4x16x16xbf16>
    %c0_6 = arith.constant 0 : index
    %c0_7 = arith.constant 0 : index
    %4 = vector.load %arg4[%c0_6, %c0_7] : memref<32x32xbf16, #tpu.memory_space<vmem>>, vector<32x32xbf16>
    %cst = arith.constant 0.000000e+00 : f32
    %5 = vector.broadcast %cst : f32 to vector<16x32xf32>
    %6 = vector.extract_strided_slice %1 {offsets = [0, 0], sizes = [16, 8], strides = [1, 1]} : vector<16x96xf32> to vector<16x8xf32>
    %7 = arith.truncf %6 : vector<16x8xf32> to vector<16x8xbf16>
    %8 = vector.extract_strided_slice %1 {offsets = [0, 32], sizes = [16, 8], strides = [1, 1]} : vector<16x96xf32> to vector<16x8xf32>
    %9 = arith.truncf %8 : vector<16x8xf32> to vector<16x8xbf16>
    %10 = vector.extract_strided_slice %1 {offsets = [0, 64], sizes = [16, 8], strides = [1, 1]} : vector<16x96xf32> to vector<16x8xf32>
    %11 = arith.truncf %10 : vector<16x8xf32> to vector<16x8xbf16>
    %cst_8 = arith.constant dense<0.000000e+00> : vector<16x16xf32>
    %12 = tpu.matmul %7, %9, %cst_8 {dimension_numbers = #tpu.dot_dimension_numbers<[1], [1], [0], [0], [0, 0, 1, 0], [], []>} : vector<16x8xbf16>, vector<16x8xbf16>, vector<16x16xf32> -> vector<16x16xf32>
    %cst_9 = arith.constant 0.353553385 : f32
    %13 = vector.broadcast %cst_9 : f32 to vector<16x16xf32>
    %14 = arith.mulf %12, %13 : vector<16x16xf32>
    %15 = vector.extract_strided_slice %3 {offsets = [0, 0, 0], sizes = [1, 16, 16], strides = [1, 1, 1]} : vector<4x16x16xbf16> to vector<1x16x16xbf16>
    %16 = vector.shape_cast %15 : vector<1x16x16xbf16> to vector<16x16xbf16>
    %17 = arith.extf %16 : vector<16x16xbf16> to vector<16x16xf32>
    %18 = arith.addf %14, %17 : vector<16x16xf32>
    %cst_10 = arith.constant dense<0xFF800000> : vector<16xf32>
    %19 = vector.multi_reduction <maximumf>, %18, %cst_10 [1] : vector<16x16xf32> to vector<16xf32>
    %20 = vector.shape_cast %19 : vector<16xf32> to vector<16x1xf32>
    %21 = vector.broadcast %20 : vector<16x1xf32> to vector<16x16xf32>
    %22 = arith.subf %18, %21 : vector<16x16xf32>
    %23 = math.exp %22 : vector<16x16xf32>
    %cst_11 = arith.constant dense<0.000000e+00> : vector<16xf32>
    %24 = vector.multi_reduction <add>, %23, %cst_11 [1] : vector<16x16xf32> to vector<16xf32>
    %25 = vector.shape_cast %24 : vector<16xf32> to vector<16x1xf32>
    %26 = tpu.reciprocal %25 {approx = true} : vector<16x1xf32> -> vector<16x1xf32>
    %27 = vector.broadcast %26 : vector<16x1xf32> to vector<16x16xf32>
    %28 = arith.mulf %23, %27 : vector<16x16xf32>
    %29 = arith.truncf %28 : vector<16x16xf32> to vector<16x16xbf16>
    %cst_12 = arith.constant dense<0.000000e+00> : vector<16x8xf32>
    %30 = tpu.matmul %29, %11, %cst_12 {dimension_numbers = #tpu.dot_dimension_numbers<[1], [0], [0], [1], [0, 0, 1, 1], [], []>} : vector<16x16xbf16>, vector<16x8xbf16>, vector<16x8xf32> -> vector<16x8xf32>
    %31 = vector.extract_strided_slice %4 {offsets = [0, 0], sizes = [8, 32], strides = [1, 1]} : vector<32x32xbf16> to vector<8x32xbf16>
    %32 = arith.truncf %30 : vector<16x8xf32> to vector<16x8xbf16>
    %cst_13 = arith.constant dense<0.000000e+00> : vector<16x32xf32>
    %33 = tpu.matmul %32, %31, %cst_13 {dimension_numbers = #tpu.dot_dimension_numbers<[1], [0], [0], [1], [0, 0, 1, 1], [], []>} : vector<16x8xbf16>, vector<8x32xbf16>, vector<16x32xf32> -> vector<16x32xf32>
    %34 = arith.addf %5, %33 : vector<16x32xf32>
    %35 = vector.extract_strided_slice %1 {offsets = [0, 8], sizes = [16, 8], strides = [1, 1]} : vector<16x96xf32> to vector<16x8xf32>
    %36 = arith.truncf %35 : vector<16x8xf32> to vector<16x8xbf16>
    %37 = vector.extract_strided_slice %1 {offsets = [0, 40], sizes = [16, 8], strides = [1, 1]} : vector<16x96xf32> to vector<16x8xf32>
    %38 = arith.truncf %37 : vector<16x8xf32> to vector<16x8xbf16>
    %39 = vector.extract_strided_slice %1 {offsets = [0, 72], sizes = [16, 8], strides = [1, 1]} : vector<16x96xf32> to vector<16x8xf32>
    %40 = arith.truncf %39 : vector<16x8xf32> to vector<16x8xbf16>
    %cst_14 = arith.constant dense<0.000000e+00> : vector<16x16xf32>
    %41 = tpu.matmul %36, %38, %cst_14 {dimension_numbers = #tpu.dot_dimension_numbers<[1], [1], [0], [0], [0, 0, 1, 0], [], []>} : vector<16x8xbf16>, vector<16x8xbf16>, vector<16x16xf32> -> vector<16x16xf32>
    %cst_15 = arith.constant 0.353553385 : f32
    %42 = vector.broadcast %cst_15 : f32 to vector<16x16xf32>
    %43 = arith.mulf %41, %42 : vector<16x16xf32>
    %44 = vector.extract_strided_slice %3 {offsets = [1, 0, 0], sizes = [1, 16, 16], strides = [1, 1, 1]} : vector<4x16x16xbf16> to vector<1x16x16xbf16>
    %45 = vector.shape_cast %44 : vector<1x16x16xbf16> to vector<16x16xbf16>
    %46 = arith.extf %45 : vector<16x16xbf16> to vector<16x16xf32>
    %47 = arith.addf %43, %46 : vector<16x16xf32>
    %cst_16 = arith.constant dense<0xFF800000> : vector<16xf32>
    %48 = vector.multi_reduction <maximumf>, %47, %cst_16 [1] : vector<16x16xf32> to vector<16xf32>
    %49 = vector.shape_cast %48 : vector<16xf32> to vector<16x1xf32>
    %50 = vector.broadcast %49 : vector<16x1xf32> to vector<16x16xf32>
    %51 = arith.subf %47, %50 : vector<16x16xf32>
    %52 = math.exp %51 : vector<16x16xf32>
    %cst_17 = arith.constant dense<0.000000e+00> : vector<16xf32>
    %53 = vector.multi_reduction <add>, %52, %cst_17 [1] : vector<16x16xf32> to vector<16xf32>
    %54 = vector.shape_cast %53 : vector<16xf32> to vector<16x1xf32>
    %55 = tpu.reciprocal %54 {approx = true} : vector<16x1xf32> -> vector<16x1xf32>
    %56 = vector.broadcast %55 : vector<16x1xf32> to vector<16x16xf32>
    %57 = arith.mulf %52, %56 : vector<16x16xf32>
    %58 = arith.truncf %57 : vector<16x16xf32> to vector<16x16xbf16>
    %cst_18 = arith.constant dense<0.000000e+00> : vector<16x8xf32>
    %59 = tpu.matmul %58, %40, %cst_18 {dimension_numbers = #tpu.dot_dimension_numbers<[1], [0], [0], [1], [0, 0, 1, 1], [], []>} : vector<16x16xbf16>, vector<16x8xbf16>, vector<16x8xf32> -> vector<16x8xf32>
    %60 = vector.extract_strided_slice %4 {offsets = [8, 0], sizes = [8, 32], strides = [1, 1]} : vector<32x32xbf16> to vector<8x32xbf16>
    %61 = arith.truncf %59 : vector<16x8xf32> to vector<16x8xbf16>
    %cst_19 = arith.constant dense<0.000000e+00> : vector<16x32xf32>
    %62 = tpu.matmul %61, %60, %cst_19 {dimension_numbers = #tpu.dot_dimension_numbers<[1], [0], [0], [1], [0, 0, 1, 1], [], []>} : vector<16x8xbf16>, vector<8x32xbf16>, vector<16x32xf32> -> vector<16x32xf32>
    %63 = arith.addf %34, %62 : vector<16x32xf32>
    %64 = vector.extract_strided_slice %1 {offsets = [0, 16], sizes = [16, 8], strides = [1, 1]} : vector<16x96xf32> to vector<16x8xf32>
    %65 = arith.truncf %64 : vector<16x8xf32> to vector<16x8xbf16>
    %66 = vector.extract_strided_slice %1 {offsets = [0, 48], sizes = [16, 8], strides = [1, 1]} : vector<16x96xf32> to vector<16x8xf32>
    %67 = arith.truncf %66 : vector<16x8xf32> to vector<16x8xbf16>
    %68 = vector.extract_strided_slice %1 {offsets = [0, 80], sizes = [16, 8], strides = [1, 1]} : vector<16x96xf32> to vector<16x8xf32>
    %69 = arith.truncf %68 : vector<16x8xf32> to vector<16x8xbf16>
    %cst_20 = arith.constant dense<0.000000e+00> : vector<16x16xf32>
    %70 = tpu.matmul %65, %67, %cst_20 {dimension_numbers = #tpu.dot_dimension_numbers<[1], [1], [0], [0], [0, 0, 1, 0], [], []>} : vector<16x8xbf16>, vector<16x8xbf16>, vector<16x16xf32> -> vector<16x16xf32>
    %cst_21 = arith.constant 0.353553385 : f32
    %71 = vector.broadcast %cst_21 : f32 to vector<16x16xf32>
    %72 = arith.mulf %70, %71 : vector<16x16xf32>
    %73 = vector.extract_strided_slice %3 {offsets = [2, 0, 0], sizes = [1, 16, 16], strides = [1, 1, 1]} : vector<4x16x16xbf16> to vector<1x16x16xbf16>
    %74 = vector.shape_cast %73 : vector<1x16x16xbf16> to vector<16x16xbf16>
    %75 = arith.extf %74 : vector<16x16xbf16> to vector<16x16xf32>
    %76 = arith.addf %72, %75 : vector<16x16xf32>
    %cst_22 = arith.constant dense<0xFF800000> : vector<16xf32>
    %77 = vector.multi_reduction <maximumf>, %76, %cst_22 [1] : vector<16x16xf32> to vector<16xf32>
    %78 = vector.shape_cast %77 : vector<16xf32> to vector<16x1xf32>
    %79 = vector.broadcast %78 : vector<16x1xf32> to vector<16x16xf32>
    %80 = arith.subf %76, %79 : vector<16x16xf32>
    %81 = math.exp %80 : vector<16x16xf32>
    %cst_23 = arith.constant dense<0.000000e+00> : vector<16xf32>
    %82 = vector.multi_reduction <add>, %81, %cst_23 [1] : vector<16x16xf32> to vector<16xf32>
    %83 = vector.shape_cast %82 : vector<16xf32> to vector<16x1xf32>
    %84 = tpu.reciprocal %83 {approx = true} : vector<16x1xf32> -> vector<16x1xf32>
    %85 = vector.broadcast %84 : vector<16x1xf32> to vector<16x16xf32>
    %86 = arith.mulf %81, %85 : vector<16x16xf32>
    %87 = arith.truncf %86 : vector<16x16xf32> to vector<16x16xbf16>
    %cst_24 = arith.constant dense<0.000000e+00> : vector<16x8xf32>
    %88 = tpu.matmul %87, %69, %cst_24 {dimension_numbers = #tpu.dot_dimension_numbers<[1], [0], [0], [1], [0, 0, 1, 1], [], []>} : vector<16x16xbf16>, vector<16x8xbf16>, vector<16x8xf32> -> vector<16x8xf32>
    %89 = vector.extract_strided_slice %4 {offsets = [16, 0], sizes = [8, 32], strides = [1, 1]} : vector<32x32xbf16> to vector<8x32xbf16>
    %90 = arith.truncf %88 : vector<16x8xf32> to vector<16x8xbf16>
    %cst_25 = arith.constant dense<0.000000e+00> : vector<16x32xf32>
    %91 = tpu.matmul %90, %89, %cst_25 {dimension_numbers = #tpu.dot_dimension_numbers<[1], [0], [0], [1], [0, 0, 1, 1], [], []>} : vector<16x8xbf16>, vector<8x32xbf16>, vector<16x32xf32> -> vector<16x32xf32>
    %92 = arith.addf %63, %91 : vector<16x32xf32>
    %93 = vector.extract_strided_slice %1 {offsets = [0, 24], sizes = [16, 8], strides = [1, 1]} : vector<16x96xf32> to vector<16x8xf32>
    %94 = arith.truncf %93 : vector<16x8xf32> to vector<16x8xbf16>
    %95 = vector.extract_strided_slice %1 {offsets = [0, 56], sizes = [16, 8], strides = [1, 1]} : vector<16x96xf32> to vector<16x8xf32>
    %96 = arith.truncf %95 : vector<16x8xf32> to vector<16x8xbf16>
    %97 = vector.extract_strided_slice %1 {offsets = [0, 88], sizes = [16, 8], strides = [1, 1]} : vector<16x96xf32> to vector<16x8xf32>
    %98 = arith.truncf %97 : vector<16x8xf32> to vector<16x8xbf16>
    %cst_26 = arith.constant dense<0.000000e+00> : vector<16x16xf32>
    %99 = tpu.matmul %94, %96, %cst_26 {dimension_numbers = #tpu.dot_dimension_numbers<[1], [1], [0], [0], [0, 0, 1, 0], [], []>} : vector<16x8xbf16>, vector<16x8xbf16>, vector<16x16xf32> -> vector<16x16xf32>
    %cst_27 = arith.constant 0.353553385 : f32
    %100 = vector.broadcast %cst_27 : f32 to vector<16x16xf32>
    %101 = arith.mulf %99, %100 : vector<16x16xf32>
    %102 = vector.extract_strided_slice %3 {offsets = [3, 0, 0], sizes = [1, 16, 16], strides = [1, 1, 1]} : vector<4x16x16xbf16> to vector<1x16x16xbf16>
    %103 = vector.shape_cast %102 : vector<1x16x16xbf16> to vector<16x16xbf16>
    %104 = arith.extf %103 : vector<16x16xbf16> to vector<16x16xf32>
    %105 = arith.addf %101, %104 : vector<16x16xf32>
    %cst_28 = arith.constant dense<0xFF800000> : vector<16xf32>
    %106 = vector.multi_reduction <maximumf>, %105, %cst_28 [1] : vector<16x16xf32> to vector<16xf32>
    %107 = vector.shape_cast %106 : vector<16xf32> to vector<16x1xf32>
    %108 = vector.broadcast %107 : vector<16x1xf32> to vector<16x16xf32>
    %109 = arith.subf %105, %108 : vector<16x16xf32>
    %110 = math.exp %109 : vector<16x16xf32>
    %cst_29 = arith.constant dense<0.000000e+00> : vector<16xf32>
    %111 = vector.multi_reduction <add>, %110, %cst_29 [1] : vector<16x16xf32> to vector<16xf32>
    %112 = vector.shape_cast %111 : vector<16xf32> to vector<16x1xf32>
    %113 = tpu.reciprocal %112 {approx = true} : vector<16x1xf32> -> vector<16x1xf32>
    %114 = vector.broadcast %113 : vector<16x1xf32> to vector<16x16xf32>
    %115 = arith.mulf %110, %114 : vector<16x16xf32>
    %116 = arith.truncf %115 : vector<16x16xf32> to vector<16x16xbf16>
    %cst_30 = arith.constant dense<0.000000e+00> : vector<16x8xf32>
    %117 = tpu.matmul %116, %98, %cst_30 {dimension_numbers = #tpu.dot_dimension_numbers<[1], [0], [0], [1], [0, 0, 1, 1], [], []>} : vector<16x16xbf16>, vector<16x8xbf16>, vector<16x8xf32> -> vector<16x8xf32>
    %118 = vector.extract_strided_slice %4 {offsets = [24, 0], sizes = [8, 32], strides = [1, 1]} : vector<32x32xbf16> to vector<8x32xbf16>
    %119 = arith.truncf %117 : vector<16x8xf32> to vector<16x8xbf16>
    %cst_31 = arith.constant dense<0.000000e+00> : vector<16x32xf32>
    %120 = tpu.matmul %119, %118, %cst_31 {dimension_numbers = #tpu.dot_dimension_numbers<[1], [0], [0], [1], [0, 0, 1, 1], [], []>} : vector<16x8xbf16>, vector<8x32xbf16>, vector<16x32xf32> -> vector<16x32xf32>
    %121 = arith.addf %92, %120 : vector<16x32xf32>
    %c0_32 = arith.constant 0 : index
    %c0_33 = arith.constant 0 : index
    %c0_34 = arith.constant 0 : index
    %122 = vector.load %arg3[%c0_32, %c0_33, %c0_34] : memref<1x16x32xf32, #tpu.memory_space<vmem>>, vector<1x16x32xf32>
    %123 = vector.shape_cast %122 : vector<1x16x32xf32> to vector<16x32xf32>
    %124 = arith.addf %123, %121 : vector<16x32xf32>
    %c0_35 = arith.constant 0 : index
    %c0_36 = arith.constant 0 : index
    %125 = vector.load %arg5[%c0_35, %c0_36] : memref<1x32xf32, #tpu.memory_space<vmem>>, vector<1x32xf32>
    %126 = vector.broadcast %125 : vector<1x32xf32> to vector<16x32xf32>
    %127 = arith.addf %124, %126 : vector<16x32xf32>
    %c0_37 = arith.constant 0 : index
    %c0_38 = arith.constant 0 : index
    %128 = vector.load %arg6[%c0_37, %c0_38] : memref<1x32xf32, #tpu.memory_space<vmem>>, vector<1x32xf32>
    %c0_39 = arith.constant 0 : index
    %c0_40 = arith.constant 0 : index
    %129 = vector.load %arg7[%c0_39, %c0_40] : memref<1x32xf32, #tpu.memory_space<vmem>>, vector<1x32xf32>
    %cst_41 = arith.constant dense<0.000000e+00> : vector<16xf32>
    %130 = vector.multi_reduction <add>, %127, %cst_41 [1] : vector<16x32xf32> to vector<16xf32>
    %131 = vector.shape_cast %130 : vector<16xf32> to vector<16x1xf32>
    %cst_42 = arith.constant 3.200000e+01 : f32
    %132 = vector.broadcast %cst_42 : f32 to vector<16x1xf32>
    %133 = arith.divf %131, %132 : vector<16x1xf32>
    %134 = vector.broadcast %133 : vector<16x1xf32> to vector<16x32xf32>
    %135 = arith.subf %127, %134 : vector<16x32xf32>
    %136 = arith.mulf %135, %135 : vector<16x32xf32>
    %cst_43 = arith.constant dense<0.000000e+00> : vector<16xf32>
    %137 = vector.multi_reduction <add>, %136, %cst_43 [1] : vector<16x32xf32> to vector<16xf32>
    %138 = vector.shape_cast %137 : vector<16xf32> to vector<16x1xf32>
    %cst_44 = arith.constant 3.200000e+01 : f32
    %139 = vector.broadcast %cst_44 : f32 to vector<16x1xf32>
    %140 = arith.divf %138, %139 : vector<16x1xf32>
    %141 = vector.broadcast %133 : vector<16x1xf32> to vector<16x32xf32>
    %142 = arith.subf %127, %141 : vector<16x32xf32>
    %cst_45 = arith.constant 9.99999974E-6 : f32
    %143 = vector.broadcast %cst_45 : f32 to vector<16x1xf32>
    %144 = arith.addf %140, %143 : vector<16x1xf32>
    %145 = math.rsqrt %144 : vector<16x1xf32>
    %146 = vector.broadcast %145 : vector<16x1xf32> to vector<16x32xf32>
    %147 = arith.mulf %142, %146 : vector<16x32xf32>
    %148 = vector.broadcast %128 : vector<1x32xf32> to vector<16x32xf32>
    %149 = arith.mulf %147, %148 : vector<16x32xf32>
    %150 = vector.broadcast %129 : vector<1x32xf32> to vector<16x32xf32>
    %151 = arith.addf %149, %150 : vector<16x32xf32>
    %c0_46 = arith.constant 0 : index
    %c0_47 = arith.constant 0 : index
    %152 = vector.load %arg8[%c0_46, %c0_47] : memref<32x128xbf16, #tpu.memory_space<vmem>>, vector<32x128xbf16>
    %153 = arith.truncf %151 : vector<16x32xf32> to vector<16x32xbf16>
    %cst_48 = arith.constant dense<0.000000e+00> : vector<16x128xf32>
    %154 = tpu.matmul %153, %152, %cst_48 {dimension_numbers = #tpu.dot_dimension_numbers<[1], [0], [0], [1], [0, 0, 1, 1], [], []>} : vector<16x32xbf16>, vector<32x128xbf16>, vector<16x128xf32> -> vector<16x128xf32>
    %c0_49 = arith.constant 0 : index
    %c0_50 = arith.constant 0 : index
    %155 = vector.load %arg9[%c0_49, %c0_50] : memref<1x128xf32, #tpu.memory_space<vmem>>, vector<1x128xf32>
    %156 = vector.broadcast %155 : vector<1x128xf32> to vector<16x128xf32>
    %157 = arith.addf %154, %156 : vector<16x128xf32>
    %158 = vector.extract_strided_slice %157 {offsets = [0, 0], sizes = [16, 64], strides = [1, 1]} : vector<16x128xf32> to vector<16x64xf32>
    %159 = vector.extract_strided_slice %157 {offsets = [0, 64], sizes = [16, 64], strides = [1, 1]} : vector<16x128xf32> to vector<16x64xf32>
    %cst_51 = arith.constant 0.000000e+00 : f32
    %160 = vector.broadcast %cst_51 : f32 to vector<16x64xf32>
    %161 = arith.subf %160, %159 : vector<16x64xf32>
    %162 = math.exp %161 : vector<16x64xf32>
    %cst_52 = arith.constant 1.000000e+00 : f32
    %163 = vector.broadcast %cst_52 : f32 to vector<16x64xf32>
    %164 = arith.addf %163, %162 : vector<16x64xf32>
    %165 = tpu.reciprocal %164 {approx = true} : vector<16x64xf32> -> vector<16x64xf32>
    %166 = arith.mulf %158, %165 : vector<16x64xf32>
    %cst_53 = arith.constant 0.000000e+00 : f32
    %167 = vector.broadcast %cst_53 : f32 to vector<3x64xf32>
    %c0_54 = arith.constant 0 : index
    %c0_55 = arith.constant 0 : index
    %168 = vector.load %arg19[%c0_54, %c0_55] : memref<22x64xf32, #tpu.memory_space<vmem>>, vector<3x64xf32>
    tpu.vector_store %arg19[%c0_54, %c0_55], %167 {strides = array<i32>} : memref<22x64xf32, #tpu.memory_space<vmem>>, vector<3x64xf32>,
    %c3 = arith.constant 3 : index
    %c0_56 = arith.constant 0 : index
    %169 = vector.load %arg19[%c3, %c0_56] : memref<22x64xf32, #tpu.memory_space<vmem>>, vector<16x64xf32>
    tpu.vector_store %arg19[%c3, %c0_56], %166 {strides = array<i32>} : memref<22x64xf32, #tpu.memory_space<vmem>>, vector<16x64xf32>,
    %cst_57 = arith.constant 0.000000e+00 : f32
    %170 = vector.broadcast %cst_57 : f32 to vector<3x64xf32>
    %c19 = arith.constant 19 : index
    %c0_58 = arith.constant 0 : index
    %171 = vector.load %arg19[%c19, %c0_58] : memref<22x64xf32, #tpu.memory_space<vmem>>, vector<3x64xf32>
    tpu.vector_store %arg19[%c19, %c0_58], %170 {strides = array<i32>} : memref<22x64xf32, #tpu.memory_space<vmem>>, vector<3x64xf32>,
    %c0_59 = arith.constant 0 : index
    %c0_60 = arith.constant 0 : index
    %172 = vector.load %arg10[%c0_59, %c0_60] : memref<7x64xf32, #tpu.memory_space<vmem>>, vector<7x64xf32>
    %cst_61 = arith.constant 0.000000e+00 : f32
    %173 = vector.broadcast %cst_61 : f32 to vector<16x64xf32>
    %c0_62 = arith.constant 0 : index
    %c0_63 = arith.constant 0 : index
    %174 = vector.load %arg19[%c0_62, %c0_63] : memref<22x64xf32, #tpu.memory_space<vmem>>, vector<16x64xf32>
    %175 = vector.extract_strided_slice %172 {offsets = [0, 0], sizes = [1, 64], strides = [1, 1]} : vector<7x64xf32> to vector<1x64xf32>
    %176 = vector.broadcast %175 : vector<1x64xf32> to vector<16x64xf32>
    %177 = arith.mulf %174, %176 : vector<16x64xf32>
    %178 = arith.addf %173, %177 : vector<16x64xf32>
    %c1 = arith.constant 1 : index
    %c0_64 = arith.constant 0 : index
    %179 = vector.load %arg19[%c1, %c0_64] : memref<22x64xf32, #tpu.memory_space<vmem>>, vector<16x64xf32>
    %180 = vector.extract_strided_slice %172 {offsets = [1, 0], sizes = [1, 64], strides = [1, 1]} : vector<7x64xf32> to vector<1x64xf32>
    %181 = vector.broadcast %180 : vector<1x64xf32> to vector<16x64xf32>
    %182 = arith.mulf %179, %181 : vector<16x64xf32>
    %183 = arith.addf %178, %182 : vector<16x64xf32>
    %c2 = arith.constant 2 : index
    %c0_65 = arith.constant 0 : index
    %184 = vector.load %arg19[%c2, %c0_65] : memref<22x64xf32, #tpu.memory_space<vmem>>, vector<16x64xf32>
    %185 = vector.extract_strided_slice %172 {offsets = [2, 0], sizes = [1, 64], strides = [1, 1]} : vector<7x64xf32> to vector<1x64xf32>
    %186 = vector.broadcast %185 : vector<1x64xf32> to vector<16x64xf32>
    %187 = arith.mulf %184, %186 : vector<16x64xf32>
    %188 = arith.addf %183, %187 : vector<16x64xf32>
    %c3_66 = arith.constant 3 : index
    %c0_67 = arith.constant 0 : index
    %189 = vector.load %arg19[%c3_66, %c0_67] : memref<22x64xf32, #tpu.memory_space<vmem>>, vector<16x64xf32>
    %190 = vector.extract_strided_slice %172 {offsets = [3, 0], sizes = [1, 64], strides = [1, 1]} : vector<7x64xf32> to vector<1x64xf32>
    %191 = vector.broadcast %190 : vector<1x64xf32> to vector<16x64xf32>
    %192 = arith.mulf %189, %191 : vector<16x64xf32>
    %193 = arith.addf %188, %192 : vector<16x64xf32>
    %c4 = arith.constant 4 : index
    %c0_68 = arith.constant 0 : index
    %194 = vector.load %arg19[%c4, %c0_68] : memref<22x64xf32, #tpu.memory_space<vmem>>, vector<16x64xf32>
    %195 = vector.extract_strided_slice %172 {offsets = [4, 0], sizes = [1, 64], strides = [1, 1]} : vector<7x64xf32> to vector<1x64xf32>
    %196 = vector.broadcast %195 : vector<1x64xf32> to vector<16x64xf32>
    %197 = arith.mulf %194, %196 : vector<16x64xf32>
    %198 = arith.addf %193, %197 : vector<16x64xf32>
    %c5 = arith.constant 5 : index
    %c0_69 = arith.constant 0 : index
    %199 = vector.load %arg19[%c5, %c0_69] : memref<22x64xf32, #tpu.memory_space<vmem>>, vector<16x64xf32>
    %200 = vector.extract_strided_slice %172 {offsets = [5, 0], sizes = [1, 64], strides = [1, 1]} : vector<7x64xf32> to vector<1x64xf32>
    %201 = vector.broadcast %200 : vector<1x64xf32> to vector<16x64xf32>
    %202 = arith.mulf %199, %201 : vector<16x64xf32>
    %203 = arith.addf %198, %202 : vector<16x64xf32>
    %c6 = arith.constant 6 : index
    %c0_70 = arith.constant 0 : index
    %204 = vector.load %arg19[%c6, %c0_70] : memref<22x64xf32, #tpu.memory_space<vmem>>, vector<16x64xf32>
    %205 = vector.extract_strided_slice %172 {offsets = [6, 0], sizes = [1, 64], strides = [1, 1]} : vector<7x64xf32> to vector<1x64xf32>
    %206 = vector.broadcast %205 : vector<1x64xf32> to vector<16x64xf32>
    %207 = arith.mulf %204, %206 : vector<16x64xf32>
    %208 = arith.addf %203, %207 : vector<16x64xf32>
    %c0_71 = arith.constant 0 : index
    %c0_72 = arith.constant 0 : index
    %209 = vector.load %arg11[%c0_71, %c0_72] : memref<1x64xf32, #tpu.memory_space<vmem>>, vector<1x64xf32>
    %210 = vector.broadcast %209 : vector<1x64xf32> to vector<16x64xf32>
    %211 = arith.addf %208, %210 : vector<16x64xf32>
    %c0_73 = arith.constant 0 : index
    %c0_74 = arith.constant 0 : index
    %212 = vector.load %arg14[%c0_73, %c0_74] : memref<1x64xf32, #tpu.memory_space<vmem>>, vector<1x64xf32>
    %213 = vector.broadcast %212 : vector<1x64xf32> to vector<16x64xf32>
    %214 = arith.subf %211, %213 : vector<16x64xf32>
    %c0_75 = arith.constant 0 : index
    %c0_76 = arith.constant 0 : index
    %215 = vector.load %arg15[%c0_75, %c0_76] : memref<1x64xf32, #tpu.memory_space<vmem>>, vector<1x64xf32>
    %cst_77 = arith.constant 9.99999974E-6 : f32
    %216 = vector.broadcast %cst_77 : f32 to vector<1x64xf32>
    %217 = arith.addf %215, %216 : vector<1x64xf32>
    %218 = math.rsqrt %217 : vector<1x64xf32>
    %219 = vector.broadcast %218 : vector<1x64xf32> to vector<16x64xf32>
    %220 = arith.mulf %214, %219 : vector<16x64xf32>
    %c0_78 = arith.constant 0 : index
    %c0_79 = arith.constant 0 : index
    %221 = vector.load %arg12[%c0_78, %c0_79] : memref<1x64xf32, #tpu.memory_space<vmem>>, vector<1x64xf32>
    %222 = vector.broadcast %221 : vector<1x64xf32> to vector<16x64xf32>
    %223 = arith.mulf %220, %222 : vector<16x64xf32>
    %c0_80 = arith.constant 0 : index
    %c0_81 = arith.constant 0 : index
    %224 = vector.load %arg13[%c0_80, %c0_81] : memref<1x64xf32, #tpu.memory_space<vmem>>, vector<1x64xf32>
    %225 = vector.broadcast %224 : vector<1x64xf32> to vector<16x64xf32>
    %226 = arith.addf %223, %225 : vector<16x64xf32>
    %cst_82 = arith.constant 0.000000e+00 : f32
    %227 = vector.broadcast %cst_82 : f32 to vector<16x64xf32>
    %228 = arith.subf %227, %226 : vector<16x64xf32>
    %229 = math.exp %228 : vector<16x64xf32>
    %cst_83 = arith.constant 1.000000e+00 : f32
    %230 = vector.broadcast %cst_83 : f32 to vector<16x64xf32>
    %231 = arith.addf %230, %229 : vector<16x64xf32>
    %232 = tpu.reciprocal %231 {approx = true} : vector<16x64xf32> -> vector<16x64xf32>
    %233 = arith.mulf %226, %232 : vector<16x64xf32>
    %c0_84 = arith.constant 0 : index
    %c0_85 = arith.constant 0 : index
    %234 = vector.load %arg16[%c0_84, %c0_85] : memref<64x32xbf16, #tpu.memory_space<vmem>>, vector<64x32xbf16>
    %235 = arith.truncf %233 : vector<16x64xf32> to vector<16x64xbf16>
    %cst_86 = arith.constant dense<0.000000e+00> : vector<16x32xf32>
    %236 = tpu.matmul %235, %234, %cst_86 {dimension_numbers = #tpu.dot_dimension_numbers<[1], [0], [0], [1], [0, 0, 1, 1], [], []>} : vector<16x64xbf16>, vector<64x32xbf16>, vector<16x32xf32> -> vector<16x32xf32>
    %c0_87 = arith.constant 0 : index
    %c0_88 = arith.constant 0 : index
    %237 = vector.load %arg17[%c0_87, %c0_88] : memref<1x32xf32, #tpu.memory_space<vmem>>, vector<1x32xf32>
    %238 = vector.broadcast %237 : vector<1x32xf32> to vector<16x32xf32>
    %239 = arith.addf %236, %238 : vector<16x32xf32>
    %240 = arith.addf %127, %239 : vector<16x32xf32>
    %c0_89 = arith.constant 0 : index
    %c0_90 = arith.constant 0 : index
    %c0_91 = arith.constant 0 : index
    %241 = vector.load %arg18[%c0_89, %c0_90, %c0_91] : memref<1x16x32xf32, #tpu.memory_space<vmem>>, vector<1x16x32xf32>
    %242 = vector.shape_cast %241 : vector<1x16x32xf32> to vector<16x32xf32>
    %243 = vector.shape_cast %240 : vector<16x32xf32> to vector<1x16x32xf32>
    tpu.vector_store %arg18[%c0_89, %c0_90, %c0_91], %243 {strides = array<i32>} : memref<1x16x32xf32, #tpu.memory_space<vmem>>, vector<1x16x32xf32>,
    return
  }
  func.func @transform_0(%arg0: i32) -> (i32, i32, i32) {
    %c0_i32 = arith.constant 0 : i32
    %c0_i32_0 = arith.constant 0 : i32
    %c0_i32_1 = arith.constant 0 : i32
    return %arg0, %c0_i32, %c0_i32_0 : i32, i32, i32
  }
  func.func @transform_1(%arg0: i32) -> (i32, i32, i32, i32) {
    %c0_i32 = arith.constant 0 : i32
    %c0_i32_0 = arith.constant 0 : i32
    %c0_i32_1 = arith.constant 0 : i32
    %c0_i32_2 = arith.constant 0 : i32
    return %arg0, %c0_i32, %c0_i32_0, %c0_i32_1 : i32, i32, i32, i32
  }
  func.func @transform_2(%arg0: i32) -> (i32, i32, i32) {
    %c0_i32 = arith.constant 0 : i32
    %c0_i32_0 = arith.constant 0 : i32
    %c0_i32_1 = arith.constant 0 : i32
    return %arg0, %c0_i32, %c0_i32_0 : i32, i32, i32
  }
  func.func @transform_3(%arg0: i32) -> (i32, i32) {
    %c0_i32 = arith.constant 0 : i32
    %c0_i32_0 = arith.constant 0 : i32
    %c0_i32_1 = arith.constant 0 : i32
    return %c0_i32, %c0_i32_0 : i32, i32
  }
  func.func @transform_4(%arg0: i32) -> (i32, i32) {
    %c0_i32 = arith.constant 0 : i32
    %c0_i32_0 = arith.constant 0 : i32
    %c0_i32_1 = arith.constant 0 : i32
    return %c0_i32, %c0_i32_0 : i32, i32
  }
  func.func @transform_5(%arg0: i32) -> (i32, i32) {
    %c0_i32 = arith.constant 0 : i32
    %c0_i32_0 = arith.constant 0 : i32
    %c0_i32_1 = arith.constant 0 : i32
    return %c0_i32, %c0_i32_0 : i32, i32
  }
  func.func @transform_6(%arg0: i32) -> (i32, i32) {
    %c0_i32 = arith.constant 0 : i32
    %c0_i32_0 = arith.constant 0 : i32
    %c0_i32_1 = arith.constant 0 : i32
    return %c0_i32, %c0_i32_0 : i32, i32
  }
  func.func @transform_7(%arg0: i32) -> (i32, i32) {
    %c0_i32 = arith.constant 0 : i32
    %c0_i32_0 = arith.constant 0 : i32
    %c0_i32_1 = arith.constant 0 : i32
    return %c0_i32, %c0_i32_0 : i32, i32
  }
  func.func @transform_8(%arg0: i32) -> (i32, i32) {
    %c0_i32 = arith.constant 0 : i32
    %c0_i32_0 = arith.constant 0 : i32
    %c0_i32_1 = arith.constant 0 : i32
    return %c0_i32, %c0_i32_0 : i32, i32
  }
  func.func @transform_9(%arg0: i32) -> (i32, i32) {
    %c0_i32 = arith.constant 0 : i32
    %c0_i32_0 = arith.constant 0 : i32
    %c0_i32_1 = arith.constant 0 : i32
    return %c0_i32, %c0_i32_0 : i32, i32
  }
  func.func @transform_10(%arg0: i32) -> (i32, i32) {
    %c0_i32 = arith.constant 0 : i32
    %c0_i32_0 = arith.constant 0 : i32
    %c0_i32_1 = arith.constant 0 : i32
    return %c0_i32, %c0_i32_0 : i32, i32
  }
  func.func @transform_11(%arg0: i32) -> (i32, i32) {
    %c0_i32 = arith.constant 0 : i32
    %c0_i32_0 = arith.constant 0 : i32
    %c0_i32_1 = arith.constant 0 : i32
    return %c0_i32, %c0_i32_0 : i32, i32
  }
  func.func @transform_12(%arg0: i32) -> (i32, i32) {
    %c0_i32 = arith.constant 0 : i32
    %c0_i32_0 = arith.constant 0 : i32
    %c0_i32_1 = arith.constant 0 : i32
    return %c0_i32, %c0_i32_0 : i32, i32
  }
  func.func @transform_13(%arg0: i32) -> (i32, i32) {
    %c0_i32 = arith.constant 0 : i32
    %c0_i32_0 = arith.constant 0 : i32
    %c0_i32_1 = arith.constant 0 : i32
    return %c0_i32, %c0_i32_0 : i32, i32
  }
  func.func @transform_14(%arg0: i32) -> (i32, i32) {
    %c0_i32 = arith.constant 0 : i32
    %c0_i32_0 = arith.constant 0 : i32
    %c0_i32_1 = arith.constant 0 : i32
    return %c0_i32, %c0_i32_0 : i32, i32
  }
  func.func @transform_15(%arg0: i32) -> (i32, i32) {
    %c0_i32 = arith.constant 0 : i32
    %c0_i32_0 = arith.constant 0 : i32
    %c0_i32_1 = arith.constant 0 : i32
    return %c0_i32, %c0_i32_0 : i32, i32
  }
  func.func @transform_16(%arg0: i32) -> (i32, i32) {
    %c0_i32 = arith.constant 0 : i32
    %c0_i32_0 = arith.constant 0 : i32
    %c0_i32_1 = arith.constant 0 : i32
    return %c0_i32, %c0_i32_0 : i32, i32
  }
  func.func @transform_17(%arg0: i32) -> (i32, i32, i32) {
    %c0_i32 = arith.constant 0 : i32
    %c0_i32_0 = arith.constant 0 : i32
    %c0_i32_1 = arith.constant 0 : i32
    return %arg0, %c0_i32, %c0_i32_0 : i32, i32, i32
  }
}

module attributes {stable_mosaic.version = 11 : i64} {
  func.func @_ffn_post_kernel(%arg0: i32, %arg1: memref<16x32xf32, #tpu.memory_space<vmem>>, %arg2: memref<1x32xf32, #tpu.memory_space<vmem>>, %arg3: memref<1x32xf32, #tpu.memory_space<vmem>>, %arg4: memref<32x128xbf16, #tpu.memory_space<vmem>>, %arg5: memref<1x128xf32, #tpu.memory_space<vmem>>, %arg6: memref<128x32xbf16, #tpu.memory_space<vmem>>, %arg7: memref<1x32xf32, #tpu.memory_space<vmem>>, %arg8: memref<1x32xf32, #tpu.memory_space<vmem>>, %arg9: memref<1x32xf32, #tpu.memory_space<vmem>>, %arg10: memref<16x32xf32, #tpu.memory_space<vmem>>) attributes {dimension_semantics = [#tpu.dimension_semantics<parallel>], iteration_bounds = array<i64: 2>, scalar_prefetch = 0 : i64, scratch_operands = 0 : i64, tpu.core_type = #tpu.core_type<tc>, window_params = [{transform_indices = @transform_0, window_bounds = array<i64: 16, 32>}, {pipeline_mode = #tpu.pipeline_mode<synchronous>, transform_indices = @transform_1, window_bounds = array<i64: 1, 32>}, {pipeline_mode = #tpu.pipeline_mode<synchronous>, transform_indices = @transform_2, window_bounds = array<i64: 1, 32>}, {pipeline_mode = #tpu.pipeline_mode<synchronous>, transform_indices = @transform_3, window_bounds = array<i64: 32, 128>}, {pipeline_mode = #tpu.pipeline_mode<synchronous>, transform_indices = @transform_4, window_bounds = array<i64: 1, 128>}, {pipeline_mode = #tpu.pipeline_mode<synchronous>, transform_indices = @transform_5, window_bounds = array<i64: 128, 32>}, {pipeline_mode = #tpu.pipeline_mode<synchronous>, transform_indices = @transform_6, window_bounds = array<i64: 1, 32>}, {pipeline_mode = #tpu.pipeline_mode<synchronous>, transform_indices = @transform_7, window_bounds = array<i64: 1, 32>}, {pipeline_mode = #tpu.pipeline_mode<synchronous>, transform_indices = @transform_8, window_bounds = array<i64: 1, 32>}, {transform_indices = @transform_9, window_bounds = array<i64: 16, 32>}]} {
    %c0 = arith.constant 0 : index
    %c0_0 = arith.constant 0 : index
    %0 = vector.load %arg1[%c0, %c0_0] : memref<16x32xf32, #tpu.memory_space<vmem>>, vector<16x32xf32>
    %c0_1 = arith.constant 0 : index
    %c0_2 = arith.constant 0 : index
    %1 = vector.load %arg2[%c0_1, %c0_2] : memref<1x32xf32, #tpu.memory_space<vmem>>, vector<1x32xf32>
    %c0_3 = arith.constant 0 : index
    %c0_4 = arith.constant 0 : index
    %2 = vector.load %arg3[%c0_3, %c0_4] : memref<1x32xf32, #tpu.memory_space<vmem>>, vector<1x32xf32>
    %cst = arith.constant dense<0.000000e+00> : vector<16xf32>
    %3 = vector.multi_reduction <add>, %0, %cst [1] : vector<16x32xf32> to vector<16xf32>
    %4 = vector.shape_cast %3 : vector<16xf32> to vector<16x1xf32>
    %cst_5 = arith.constant 3.200000e+01 : f32
    %5 = vector.broadcast %cst_5 : f32 to vector<16x1xf32>
    %6 = arith.divf %4, %5 : vector<16x1xf32>
    %7 = vector.broadcast %6 : vector<16x1xf32> to vector<16x32xf32>
    %8 = arith.subf %0, %7 : vector<16x32xf32>
    %9 = arith.mulf %8, %8 : vector<16x32xf32>
    %cst_6 = arith.constant dense<0.000000e+00> : vector<16xf32>
    %10 = vector.multi_reduction <add>, %9, %cst_6 [1] : vector<16x32xf32> to vector<16xf32>
    %11 = vector.shape_cast %10 : vector<16xf32> to vector<16x1xf32>
    %cst_7 = arith.constant 3.200000e+01 : f32
    %12 = vector.broadcast %cst_7 : f32 to vector<16x1xf32>
    %13 = arith.divf %11, %12 : vector<16x1xf32>
    %14 = vector.broadcast %6 : vector<16x1xf32> to vector<16x32xf32>
    %15 = arith.subf %0, %14 : vector<16x32xf32>
    %cst_8 = arith.constant 9.99999974E-6 : f32
    %16 = vector.broadcast %cst_8 : f32 to vector<16x1xf32>
    %17 = arith.addf %13, %16 : vector<16x1xf32>
    %18 = math.rsqrt %17 : vector<16x1xf32>
    %19 = vector.broadcast %18 : vector<16x1xf32> to vector<16x32xf32>
    %20 = arith.mulf %15, %19 : vector<16x32xf32>
    %21 = vector.broadcast %1 : vector<1x32xf32> to vector<16x32xf32>
    %22 = arith.mulf %20, %21 : vector<16x32xf32>
    %23 = vector.broadcast %2 : vector<1x32xf32> to vector<16x32xf32>
    %24 = arith.addf %22, %23 : vector<16x32xf32>
    %c0_9 = arith.constant 0 : index
    %c0_10 = arith.constant 0 : index
    %25 = vector.load %arg4[%c0_9, %c0_10] : memref<32x128xbf16, #tpu.memory_space<vmem>>, vector<32x128xbf16>
    %26 = arith.truncf %24 : vector<16x32xf32> to vector<16x32xbf16>
    %cst_11 = arith.constant dense<0.000000e+00> : vector<16x128xf32>
    %27 = tpu.matmul %26, %25, %cst_11 {dimension_numbers = #tpu.dot_dimension_numbers<[1], [0], [0], [1], [0, 0, 1, 1], [], []>} : vector<16x32xbf16>, vector<32x128xbf16>, vector<16x128xf32> -> vector<16x128xf32>
    %c0_12 = arith.constant 0 : index
    %c0_13 = arith.constant 0 : index
    %28 = vector.load %arg5[%c0_12, %c0_13] : memref<1x128xf32, #tpu.memory_space<vmem>>, vector<1x128xf32>
    %29 = vector.broadcast %28 : vector<1x128xf32> to vector<16x128xf32>
    %30 = arith.addf %27, %29 : vector<16x128xf32>
    %cst_14 = arith.constant 0.000000e+00 : f32
    %31 = vector.broadcast %cst_14 : f32 to vector<16x128xf32>
    %32 = arith.subf %31, %30 : vector<16x128xf32>
    %33 = math.exp %32 : vector<16x128xf32>
    %cst_15 = arith.constant 1.000000e+00 : f32
    %34 = vector.broadcast %cst_15 : f32 to vector<16x128xf32>
    %35 = arith.addf %34, %33 : vector<16x128xf32>
    %36 = tpu.reciprocal %35 {approx = true} : vector<16x128xf32> -> vector<16x128xf32>
    %37 = arith.mulf %30, %36 : vector<16x128xf32>
    %c0_16 = arith.constant 0 : index
    %c0_17 = arith.constant 0 : index
    %38 = vector.load %arg6[%c0_16, %c0_17] : memref<128x32xbf16, #tpu.memory_space<vmem>>, vector<128x32xbf16>
    %39 = arith.truncf %37 : vector<16x128xf32> to vector<16x128xbf16>
    %cst_18 = arith.constant dense<0.000000e+00> : vector<16x32xf32>
    %40 = tpu.matmul %39, %38, %cst_18 {dimension_numbers = #tpu.dot_dimension_numbers<[1], [0], [0], [1], [0, 0, 1, 1], [], []>} : vector<16x128xbf16>, vector<128x32xbf16>, vector<16x32xf32> -> vector<16x32xf32>
    %c0_19 = arith.constant 0 : index
    %c0_20 = arith.constant 0 : index
    %41 = vector.load %arg7[%c0_19, %c0_20] : memref<1x32xf32, #tpu.memory_space<vmem>>, vector<1x32xf32>
    %42 = vector.broadcast %41 : vector<1x32xf32> to vector<16x32xf32>
    %43 = arith.addf %40, %42 : vector<16x32xf32>
    %cst_21 = arith.constant 5.000000e-01 : f32
    %44 = vector.broadcast %cst_21 : f32 to vector<16x32xf32>
    %45 = arith.mulf %44, %43 : vector<16x32xf32>
    %46 = arith.addf %0, %45 : vector<16x32xf32>
    %c0_22 = arith.constant 0 : index
    %c0_23 = arith.constant 0 : index
    %47 = vector.load %arg8[%c0_22, %c0_23] : memref<1x32xf32, #tpu.memory_space<vmem>>, vector<1x32xf32>
    %c0_24 = arith.constant 0 : index
    %c0_25 = arith.constant 0 : index
    %48 = vector.load %arg9[%c0_24, %c0_25] : memref<1x32xf32, #tpu.memory_space<vmem>>, vector<1x32xf32>
    %cst_26 = arith.constant dense<0.000000e+00> : vector<16xf32>
    %49 = vector.multi_reduction <add>, %46, %cst_26 [1] : vector<16x32xf32> to vector<16xf32>
    %50 = vector.shape_cast %49 : vector<16xf32> to vector<16x1xf32>
    %cst_27 = arith.constant 3.200000e+01 : f32
    %51 = vector.broadcast %cst_27 : f32 to vector<16x1xf32>
    %52 = arith.divf %50, %51 : vector<16x1xf32>
    %53 = vector.broadcast %52 : vector<16x1xf32> to vector<16x32xf32>
    %54 = arith.subf %46, %53 : vector<16x32xf32>
    %55 = arith.mulf %54, %54 : vector<16x32xf32>
    %cst_28 = arith.constant dense<0.000000e+00> : vector<16xf32>
    %56 = vector.multi_reduction <add>, %55, %cst_28 [1] : vector<16x32xf32> to vector<16xf32>
    %57 = vector.shape_cast %56 : vector<16xf32> to vector<16x1xf32>
    %cst_29 = arith.constant 3.200000e+01 : f32
    %58 = vector.broadcast %cst_29 : f32 to vector<16x1xf32>
    %59 = arith.divf %57, %58 : vector<16x1xf32>
    %60 = vector.broadcast %52 : vector<16x1xf32> to vector<16x32xf32>
    %61 = arith.subf %46, %60 : vector<16x32xf32>
    %cst_30 = arith.constant 9.99999974E-6 : f32
    %62 = vector.broadcast %cst_30 : f32 to vector<16x1xf32>
    %63 = arith.addf %59, %62 : vector<16x1xf32>
    %64 = math.rsqrt %63 : vector<16x1xf32>
    %65 = vector.broadcast %64 : vector<16x1xf32> to vector<16x32xf32>
    %66 = arith.mulf %61, %65 : vector<16x32xf32>
    %67 = vector.broadcast %47 : vector<1x32xf32> to vector<16x32xf32>
    %68 = arith.mulf %66, %67 : vector<16x32xf32>
    %69 = vector.broadcast %48 : vector<1x32xf32> to vector<16x32xf32>
    %70 = arith.addf %68, %69 : vector<16x32xf32>
    %c0_31 = arith.constant 0 : index
    %c0_32 = arith.constant 0 : index
    %71 = vector.load %arg10[%c0_31, %c0_32] : memref<16x32xf32, #tpu.memory_space<vmem>>, vector<16x32xf32>
    tpu.vector_store %arg10[%c0_31, %c0_32], %70 {strides = array<i32>} : memref<16x32xf32, #tpu.memory_space<vmem>>, vector<16x32xf32>,
    return
  }
  func.func @transform_0(%arg0: i32) -> (i32, i32) {
    %c0_i32 = arith.constant 0 : i32
    %c0_i32_0 = arith.constant 0 : i32
    return %arg0, %c0_i32 : i32, i32
  }
  func.func @transform_1(%arg0: i32) -> (i32, i32) {
    %c0_i32 = arith.constant 0 : i32
    %c0_i32_0 = arith.constant 0 : i32
    %c0_i32_1 = arith.constant 0 : i32
    return %c0_i32, %c0_i32_0 : i32, i32
  }
  func.func @transform_2(%arg0: i32) -> (i32, i32) {
    %c0_i32 = arith.constant 0 : i32
    %c0_i32_0 = arith.constant 0 : i32
    %c0_i32_1 = arith.constant 0 : i32
    return %c0_i32, %c0_i32_0 : i32, i32
  }
  func.func @transform_3(%arg0: i32) -> (i32, i32) {
    %c0_i32 = arith.constant 0 : i32
    %c0_i32_0 = arith.constant 0 : i32
    %c0_i32_1 = arith.constant 0 : i32
    return %c0_i32, %c0_i32_0 : i32, i32
  }
  func.func @transform_4(%arg0: i32) -> (i32, i32) {
    %c0_i32 = arith.constant 0 : i32
    %c0_i32_0 = arith.constant 0 : i32
    %c0_i32_1 = arith.constant 0 : i32
    return %c0_i32, %c0_i32_0 : i32, i32
  }
  func.func @transform_5(%arg0: i32) -> (i32, i32) {
    %c0_i32 = arith.constant 0 : i32
    %c0_i32_0 = arith.constant 0 : i32
    %c0_i32_1 = arith.constant 0 : i32
    return %c0_i32, %c0_i32_0 : i32, i32
  }
  func.func @transform_6(%arg0: i32) -> (i32, i32) {
    %c0_i32 = arith.constant 0 : i32
    %c0_i32_0 = arith.constant 0 : i32
    %c0_i32_1 = arith.constant 0 : i32
    return %c0_i32, %c0_i32_0 : i32, i32
  }
  func.func @transform_7(%arg0: i32) -> (i32, i32) {
    %c0_i32 = arith.constant 0 : i32
    %c0_i32_0 = arith.constant 0 : i32
    %c0_i32_1 = arith.constant 0 : i32
    return %c0_i32, %c0_i32_0 : i32, i32
  }
  func.func @transform_8(%arg0: i32) -> (i32, i32) {
    %c0_i32 = arith.constant 0 : i32
    %c0_i32_0 = arith.constant 0 : i32
    %c0_i32_1 = arith.constant 0 : i32
    return %c0_i32, %c0_i32_0 : i32, i32
  }
  func.func @transform_9(%arg0: i32) -> (i32, i32) {
    %c0_i32 = arith.constant 0 : i32
    %c0_i32_0 = arith.constant 0 : i32
    return %arg0, %c0_i32 : i32, i32
  }
}

</mosaic_0001>

<bundles_post_ra>
// kernel: model_forward.7
= control target key start
LH: loop header
LB: loop body
LE: loop exit
PB: predicated region body
PF: predicated region fallthrough
CT: control target
= control target key end

     0   :  { %s421_s12 = smov 0   ;;  %s460_s0 = inlined_call_operand.vmem [shape: f32[30,64], index: 0, kind: input, shape index: {}]   ;;  %s461_s1 = inlined_call_operand.vmem [shape: bf16[64,32], index: 1, kind: input, shape index: {}]   ;;  %s462_s2 = inlined_call_operand.vmem [shape: f32[1,32], index: 2, kind: input, shape index: {}]   ;;  %s463_s3 = inlined_call_operand.vmem [shape: f32[30,32], index: 3, kind: output, shape index: {}]  }
   0x1 LB: > { %s337_s13 = sadd.s32 4294967295, %s397_s12   ;;  %p341_p0 = scmp.ge.s32.totalorder %s397_s12, 1  ;;  %s397_s12 = sphi %s421_s12, %s13_s12  }
   0x2   : > { %p138_p1 = scmp.lt.s32.totalorder %s397_s12, 3 }
   0x4   : > { %p139_p2 = pnand %p341_p0, %p138_p1 }
   0x5   : > { %v383_v0 = vld [vmem:[%s461_s1] sm:$0xff] (!%p139_p2)   ;;  %v399_v1 = vmov (!%p139_p2), 0.0   ;;  %v384_v2 = vld [vmem:[%s461_s1 + $0x8] sm:$0xff] (!%p139_p2)   ;;  %vm400_vm0 = vmmov (!%p139_p2), 0   ;;  %s342_s18 = sshll.u32 (!%p139_p2), %s337_s13, 1  ;;  %v385_v3 = vld [vmem:[%s461_s1 + $0x10] sm:$0xff] (!%p139_p2)  }
   0x6   : > { %142 = sbr.rel (%p139_p2) target bundleno = 261 (0x105), region = 32  ;;  %361 = vmatprep.subr.bf16.mxu0 (!%p139_p2), %v399_v1  ;;  %369 = vmatprep.mubr.msk.bf16.mxu0 (!%p139_p2), %vm400_vm0, %v399_v1  ;;  %p163_p3 = scmp.lt.s32.totalorder (!%p139_p2), %s342_s18, 3  ;;  %v386_v4 = vld [vmem:[%s461_s1 + $0x18] sm:$0xff] (!%p139_p2)   ;;  %vm217_vm1 = vcmask (!%p139_p2), 523264   ;;  %v346_v8 = vld [vmem:[%s462_s2] ss:$0 sm:$0xff] (!%p139_p2) }
   0x7   : > { %362 = vmatpush3.bf16.msra.mxu0 (!%p139_p2), %v383_v0  ;;  %vm278_vm3 = vcmask (!%p139_p2), 261120  }
   0x8   : > { %363 = vmatprep.subr.bf16.mxu0 (!%p139_p2), %v399_v1 }
   0xb   : > { %364 = vmatpush3.bf16.msra.mxu0 (!%p139_p2), %v384_v2 }
   0xc   : > { %365 = vmatprep.subr.bf16.mxu0 (!%p139_p2), %v399_v1 }
   0xd   : > { %s465_s18 = smov (!%p163_p3, %s342_s18), 3 }
   0xe   : > { %s343_s21 = sshll.u32 %s465_s18, 3 }
   0xf   : > { %s166_s24 = scalar_lea.vmem %s460_s0, %s343_s21  ;;  %366 = vmatpush3.bf16.msra.mxu0 %v385_v3  ;;  %s172_s4 = scalar_lea.vmem %s463_s3, %s343_s21 }
  0x10   : > { %v175_v5 = vld [vmem:[%s166_s24] sm:$0xff]  ;;  %v176_v6 = vld [vmem:[%s166_s24 + $0x8] sm:$0xff]  ;;  %367 = vmatprep.subr.bf16.mxu0 %v399_v1 }
  0x11   : > { %v185_v7 = vpack.c.bf16 %v176_v6, %v175_v5 }
  0x13   : > { %368 = vmatpush3.bf16.msra.mxu0 %v386_v4 }
  0x16   : > { %370 = vmatmul.mubr.msk.bf16.vlgmr.msra.gmra.mrb[0].mxu0 %vm217_vm1, %v185_v7 }
  0xe9   : > { %v255_v9 = vpop.f32.mrb[0].mxu0 }
  0xea   : > { %v256_v10 = vadd.f32 %v346_v8, %v255_v9  ;;  %v371_v11 = vpop.f32.mrb[1].mxu0 }
  0xeb   : > { %v258_v12 = vpop.f32.mrb[2].mxu0 }
  0xec   : > { %v262_v13 = vmul.f32 0.999995, %v256_v10  ;;  %v259_v14 = vadd.f32 %v346_v8, %v258_v12  ;;  %v372_v15 = vpop.f32.mrb[3].mxu0 }
  0xee   : > { %v266_v16 = vmul.f32 1.442695, %v262_v13  ;;  %v263_v17 = vmul.f32 0.999995, %v259_v14  ;;  %vm264_vm2 = vcmp.gt.f32.partialorder %v262_v13, 0.0 }
  0xf0   : > { %387 = vpow2.f32 %v266_v16  ;;  %v268_v18 = vmul.f32 1.442695, %v263_v17  ;;  %vm265_vm4 = vcmp.gt.f32.partialorder %v263_v17, 0.0 }
  0xf2   : > { %389 = vpow2.f32 %v268_v18 }
  0xfa   : > { %v388_v19 = vpop.eup %387 }
  0xfb   : > { %v352_v20 = vadd.f32 -1.0, %v388_v19 }
  0xfc   : > { %v390_v21 = vpop.eup %389 }
  0xfd   : > { %v272_v22 = vmul.f32 1.6732632, %v352_v20  ;;  %v353_v23 = vadd.f32 -1.0, %v390_v21 }
  0xff   : > { %v274_v24 = vsel %vm264_vm2, %v262_v13, %v272_v22  ;;  %v273_v25 = vmul.f32 1.6732632, %v353_v23 }
 0x100   : > { %v276_v26 = vmul.f32 1.050701, %v274_v24 }
 0x101   : > { %v275_v27 = vsel %vm265_vm4, %v263_v17, %v273_v25 }
 0x102   : > { %279 = vst.msk [vmem:[%s172_s4] sm:$0xff] %vm278_vm3, %v276_v26  ;;  %v277_v28 = vmul.f32 1.050701, %v275_v27 }
 0x104   : > { %280 = vst.msk [vmem:[%s172_s4 + $0x8] sm:$0xff] %vm278_vm3, %v277_v28 }
 0x105 PF: > { %s13_s12 = sadd.s32 1, %s397_s12  }
 0x106   : > { %p10_p4 = scmp.ge.s32.totalorder %s13_s12, 4  }
 0x108   :  { %12 = sbr.rel (!%p10_p4) target bundleno = 1 (0x1), region = 62 }

// kernel: model_forward.8
= control target key start
LH: loop header
LB: loop body
LE: loop exit
PB: predicated region body
PF: predicated region fallthrough
CT: control target
= control target key end

     0   :  { %s1042_s17 = smov 0   ;;  %s1161_s0 = inlined_call_operand.vmem [shape: f32[32,32], index: 0, kind: input, shape index: {}]   ;;  %s1162_s1 = inlined_call_operand.vmem [shape: f32[1,32], index: 1, kind: input, shape index: {}]   ;;  %s1163_s2 = inlined_call_operand.vmem [shape: f32[1,32], index: 2, kind: input, shape index: {}]   ;;  %s1164_s3 = inlined_call_operand.vmem [shape: bf16[32,128], index: 3, kind: input, shape index: {}]   ;;  %s1165_s4 = inlined_call_operand.vmem [shape: f32[1,128], index: 4, kind: input, shape index: {}]   ;;  %s1166_s5 = inlined_call_operand.vmem [shape: bf16[128,32], index: 5, kind: input, shape index: {}]   ;;  %s1167_s6 = inlined_call_operand.vmem [shape: f32[1,32], index: 6, kind: input, shape index: {}]   ;;  %s1168_s7 = inlined_call_operand.vmem [shape: f32[1,32], index: 7, kind: input, shape index: {}]   ;;  %s1169_s8 = inlined_call_operand.vmem [shape: f32[1,32], index: 8, kind: input, shape index: {}]   ;;  %s1170_s9 = inlined_call_operand.vmem [shape: bf16[32,96], index: 9, kind: input, shape index: {}]   ;;  %s1171_s10 = inlined_call_operand.vmem [shape: f32[32,32], index: 10, kind: output, shape index: {0}]   ;;  %s1172_s11 = inlined_call_operand.vmem [shape: f32[32,96], index: 11, kind: output, shape index: {1}]  }
   0x1 LB: > { %s850_s18 = sadd.s32 4294967295, %s978_s17   ;;  %p854_p0 = scmp.ge.s32.totalorder %s978_s17, 1  ;;  %s978_s17 = sphi %s1042_s17, %s22_s17  }
   0x2   : > { %p341_p1 = scmp.lt.s32.totalorder %s978_s17, 3 }
   0x4   : > { %p342_p2 = pnand %p854_p0, %p341_p1 }
   0x5   : > { %s855_s19 = sshll.u32 (!%p342_p2), %s850_s18, 1  ;;  %vm409_vm0 = vcmask (!%p342_p2), 261120   ;;  %v944_v14 = vld [vmem:[%s1164_s3] sm:$0xff] (!%p342_p2)   ;;  %v980_v15 = vmov (!%p342_p2), 0.0   ;;  %v945_v16 = vld [vmem:[%s1164_s3 + $0x8] sm:$0xff] (!%p342_p2)   ;;  %vm981_vm1 = vmmov (!%p342_p2), 0  }
   0x6   : > { %345 = sbr.rel (%p342_p2) target bundleno = 1334 (0x536), region = 60  ;;  %p387_p3 = scmp.lt.s32.totalorder (!%p342_p2), %s855_s19, 3  ;;  %898 = vmatprep.subr.bf16.mxu0 (!%p342_p2), %v980_v15  ;;  %906 = vmatprep.subr.bf16.mxu1 (!%p342_p2), %v980_v15  ;;  %v861_v25 = vld [vmem:[%s1162_s1] ss:$0 sm:$0xff] (!%p342_p2)  ;;  %v947_v35 = vld [vmem:[%s1166_s5 + $0x8] sm:$0xff] (!%p342_p2)   ;;  %v948_v36 = vld [vmem:[%s1166_s5 + $0x10] sm:$0xff] (!%p342_p2)  }
   0x7   : > { %899 = vmatpush3.bf16.msra.mxu0 (!%p342_p2), %v944_v14  ;;  %902 = vmatprep.mubr.msk.bf16.mxu0 (!%p342_p2), %vm981_vm1, %v980_v15  ;;  %v862_v29 = vld [vmem:[%s1163_s2] ss:$0 sm:$0xff] (!%p342_p2)  ;;  %v949_v37 = vld [vmem:[%s1166_s5 + $0x18] sm:$0xff] (!%p342_p2)   ;;  %v951_v39 = vld [vmem:[%s1166_s5 + $0x28] sm:$0xff] (!%p342_p2)   ;;  %vm757_vm2 = vcmask (!%p342_p2), 785408  }
   0x8   : > { %900 = vmatprep.subr.bf16.mxu0 (!%p342_p2), %v980_v15  ;;  %922 = vmatprep.mubr.msk.bf16.mxu1 (!%p342_p2), %vm981_vm1, %v980_v15  ;;  %v946_v34 = vld [vmem:[%s1166_s5] sm:$0xff] (!%p342_p2)   ;;  %v952_v40 = vld [vmem:[%s1166_s5 + $0x30] sm:$0xff] (!%p342_p2)   ;;  %v953_v41 = vld [vmem:[%s1166_s5 + $0x38] sm:$0xff] (!%p342_p2)  }
   0x9   : > { %907 = vmatpush3.bf16.msra.mxu1 (!%p342_p2), %v946_v34  ;;  %v950_v38 = vld [vmem:[%s1166_s5 + $0x20] sm:$0xff] (!%p342_p2)  }
   0xa   : > { %908 = vmatprep.subr.bf16.mxu1 (!%p342_p2), %v980_v15  ;;  %v863_v42 = vld [vmem:[%s1165_s4] ss:$0 sm:$0xff] (!%p342_p2) }
   0xb   : > { %901 = vmatpush3.bf16.msra.mxu0 (!%p342_p2), %v945_v16  ;;  %v867_v62 = vld [vmem:[%s1167_s6] ss:$0 sm:$0xff] (!%p342_p2) }
   0xc   : > { %926 = vmatprep.subr.bf16.mxu0 (!%p342_p2), %v980_v15 }
   0xd   : > { %s1174_s19 = smov (!%p387_p3, %s855_s19), 3  ;;  %909 = vmatpush3.bf16.msra.mxu1 %v947_v35  ;;  %v877_v35 = vld [vmem:[%s1169_s8] ss:$0 sm:$0xff] }
   0xe   : > { %s1050_s20 = sshll.u32 %s1174_s19, 3  ;;  %910 = vmatprep.subr.bf16.mxu1 %v980_v15 }
   0xf   : > { %s390_s23 = scalar_lea.vmem %s1161_s0, %s1050_s20  ;;  %s396_s19 = scalar_lea.vmem %s1171_s10, %s1050_s20 }
  0x10   : > { %v1056_v0 = vld [vmem:[%s390_s23] sm:$0xff]  ;;  %v1058_v1 = vld [vmem:[%s390_s23 + $0x8] sm:$0xff]  ;;  %s402_s12 = scalar_lea.vmem %s1172_s11, %s1050_s20 }
  0x11   : > { %v410_v2 = vsel %vm409_vm0, %v1056_v0, 0.0  ;;  %v413_v3 = vsel %vm409_vm0, %v1058_v1, 0.0  ;;  %911 = vmatpush3.bf16.msra.mxu1 %v948_v36 }
  0x12   : > { %411 = vadd.xlane.f32.xlu0 %v410_v2  ;;  %912 = vmatprep.subr.bf16.mxu1 %v980_v15 }
  0x15   : > { %913 = vmatpush3.bf16.msra.mxu1 %v949_v37 }
  0x16   : > { %414 = vadd.xlane.f32.xlu0 %v413_v3  ;;  %914 = vmatprep.subr.bf16.mxu1 %v980_v15 }
  0x19   : > { %915 = vmatpush3.bf16.msra.mxu1 %v950_v38 }
  0x1a   : > { %916 = vmatprep.subr.bf16.mxu1 %v980_v15 }
  0x1d   : > { %917 = vmatpush3.bf16.msra.mxu1 %v951_v39 }
  0x1e   : > { %918 = vmatprep.subr.bf16.mxu1 %v980_v15 }
  0x21   : > { %919 = vmatpush3.bf16.msra.mxu1 %v952_v40 }
  0x22   : > { %920 = vmatprep.subr.bf16.mxu1 %v980_v15 }
  0x25   : > { %921 = vmatpush3.bf16.msra.mxu1 %v953_v41 }
  0x9f   : > { %v412_v4 = vpop.xlane.xlu0 %411 }
  0xa0   : > { %v417_v5 = vmul.f32 0.03125, %v412_v4 }
  0xa2   : > { %v419_v6 = vsub.f32 %v1056_v0, %v417_v5 }
  0xa3   : > { %v415_v7 = vpop.xlane.xlu0 %414 }
  0xa4   : > { %v418_v8 = vmul.f32 0.03125, %v415_v7  ;;  %v421_v9 = vmul.f32 %v419_v6, %v419_v6 }
  0xa6   : > { %v420_v10 = vsub.f32 %v1058_v1, %v418_v8  ;;  %v423_v11 = vsel %vm409_vm0, %v421_v9, 0.0 }
  0xa7   : > { %424 = vadd.xlane.f32.xlu1 %v423_v11 }
  0xa8   : > { %v422_v12 = vmul.f32 %v420_v10, %v420_v10 }
  0xaa   : > { %v426_v13 = vsel %vm409_vm0, %v422_v12, 0.0 }
  0xab   : > { %427 = vadd.xlane.f32.xlu1 %v426_v13 }
 0x134   : > { %v425_v17 = vpop.xlane.xlu1 %424 }
 0x135   : > { %v429_v18 = vmul.f32 0.03125, %v425_v17 }
 0x137   : > { %v431_v19 = vadd.f32 1e-05, %v429_v18 }
 0x138   : > { %v428_v20 = vpop.xlane.xlu1 %427 }
 0x139   : > { %956 = vrsqrt.f32 %v431_v19  ;;  %v430_v21 = vmul.f32 0.03125, %v428_v20 }
 0x13b   : > { %v432_v22 = vadd.f32 1e-05, %v430_v21 }
 0x13d   : > { %958 = vrsqrt.f32 %v432_v22  ;;  %v954_v22 = vld [vmem:[%s1170_s9] sm:$0xff]  }
 0x143   : > { %v957_v23 = vpop.eup %956 }
 0x144   : > { %v435_v24 = vmul.f32 %v957_v23, %v419_v6  ;;  %v955_v23 = vld [vmem:[%s1170_s9 + $0x8] sm:$0xff]  }
 0x146   : > { %v443_v28 = vmul.f32 %v861_v25, %v435_v24 }
 0x147   : > { %v959_v26 = vpop.eup %958 }
 0x148   : > { %v436_v27 = vmul.f32 %v959_v26, %v420_v10  ;;  %v451_v31 = vadd.f32 %v862_v29, %v443_v28 }
 0x14a   : > { %v444_v30 = vmul.f32 %v861_v25, %v436_v27 }
 0x14c   : > { %v452_v32 = vadd.f32 %v862_v29, %v444_v30 }
 0x14e   : > { %v457_v33 = vpack.c.bf16 %v452_v32, %v451_v31  ;;  %v876_v31 = vld [vmem:[%s1168_s7] ss:$0 sm:$0xff] }
 0x150   : > { %903 = vmatmul.mubr.msk.bf16.vlgmr.msra.gmra.mrb[0].mxu0 %vm409_vm0, %v457_v33 }
 0x151   : > { %930 = vmatprep.mubr.msk.bf16.mxu0 %vm981_vm1, %v980_v15  ;;  %927 = vmatpush3.bf16.msra.mxu0 %v954_v22 }
 0x152   : > { %928 = vmatprep.subr.bf16.mxu0 %v980_v15 }
 0x155   : > { %929 = vmatpush3.bf16.msra.mxu0 %v955_v23 }
 0x223   : > { %v514_v43 = vpop.f32.mrb[0].mxu0 }
 0x224   : > { %v515_v44 = vadd.f32 %v863_v42, %v514_v43  ;;  %v904_v45 = vpop.f32.mrb[1].mxu0 }
 0x225   : > { %v517_v46 = vpop.f32.mrb[2].mxu0 }
 0x226   : > { %v521_v47 = vsub.f32 0.0, %v515_v44  ;;  %v518_v48 = vadd.f32 %v863_v42, %v517_v46  ;;  %v905_v49 = vpop.f32.mrb[3].mxu0 }
 0x228   : > { %v523_v50 = vmul.f32 1.442695, %v521_v47  ;;  %v522_v51 = vsub.f32 0.0, %v518_v48 }
 0x22a   : > { %960 = vpow2.f32 %v523_v50  ;;  %v525_v52 = vmul.f32 1.442695, %v522_v51 }
 0x22c   : > { %962 = vpow2.f32 %v525_v52 }
 0x234   : > { %v961_v53 = vpop.eup %960 }
 0x235   : > { %v527_v54 = vadd.f32 1.0, %v961_v53 }
 0x236   : > { %v963_v55 = vpop.eup %962 }
 0x237   : > { %964 = vrcp.f32 %v527_v54  ;;  %v528_v56 = vadd.f32 1.0, %v963_v55 }
 0x239   : > { %966 = vrcp.f32 %v528_v56 }
 0x241   : > { %v965_v57 = vpop.eup %964 }
 0x242   : > { %v531_v59 = vmul.f32 %v965_v57, %v515_v44 }
 0x243   : > { %v967_v58 = vpop.eup %966 }
 0x244   : > { %v532_v60 = vmul.f32 %v967_v58, %v518_v48 }
 0x246   : > { %v549_v61 = vpack.c.bf16 %v532_v60, %v531_v59 }
 0x248   : > { %923 = vmatmul.mubr.bf16.vlgmr.msra.gmra.mrb[0].mxu1 %v549_v61 }
 0x31b   : > { %v639_v63 = vpop.f32.mrb[0].mxu1 }
 0x31c   : > { %v640_v2 = vadd.f32 %v867_v62, %v639_v63  ;;  %v924_v3 = vpop.f32.mrb[1].mxu1 }
 0x31d   : > { %v642_v4 = vpop.f32.mrb[2].mxu1 }
 0x31e   : > { %v646_v5 = vmul.f32 0.5, %v640_v2  ;;  %v643_v6 = vadd.f32 %v867_v62, %v642_v4  ;;  %v925_v7 = vpop.f32.mrb[3].mxu1 }
 0x320   : > { %v648_v8 = vadd.f32 %v646_v5, %v1056_v0  ;;  %v647_v9 = vmul.f32 0.5, %v643_v6 }
 0x322   : > { %650 = vst.msk [vmem:[%s396_s19] sm:$0xff] %vm409_vm0, %v648_v8  ;;  %v649_v10 = vadd.f32 %v647_v9, %v1058_v1  ;;  %v654_v11 = vsel %vm409_vm0, %v648_v8, 0.0 }
 0x323   : > { %655 = vadd.xlane.f32.xlu0 %v654_v11 }
 0x324   : > { %651 = vst.msk [vmem:[%s396_s19 + $0x8] sm:$0xff] %vm409_vm0, %v649_v10  ;;  %v657_v12 = vsel %vm409_vm0, %v649_v10, 0.0 }
 0x325   : > { %658 = vadd.xlane.f32.xlu1 %v657_v12 }
 0x3b0   : > { %v656_v13 = vpop.xlane.xlu0 %655 }
 0x3b1   : > { %v660_v14 = vmul.f32 0.03125, %v656_v13 }
 0x3b2   : > { %v659_v16 = vpop.xlane.xlu1 %658 }
 0x3b3   : > { %v662_v17 = vsub.f32 %v648_v8, %v660_v14  ;;  %v661_v18 = vmul.f32 0.03125, %v659_v16 }
 0x3b5   : > { %v663_v19 = vsub.f32 %v649_v10, %v661_v18  ;;  %v664_v0 = vmul.f32 %v662_v17, %v662_v17 }
 0x3b7   : > { %v666_v20 = vsel %vm409_vm0, %v664_v0, 0.0  ;;  %v665_v21 = vmul.f32 %v663_v19, %v663_v19 }
 0x3b8   : > { %667 = vadd.xlane.f32.xlu0 %v666_v20 }
 0x3b9   : > { %v669_v1 = vsel %vm409_vm0, %v665_v21, 0.0 }
 0x3ba   : > { %670 = vadd.xlane.f32.xlu1 %v669_v1 }
 0x445   : > { %v668_v24 = vpop.xlane.xlu0 %667 }
 0x446   : > { %v672_v25 = vmul.f32 0.03125, %v668_v24 }
 0x447   : > { %v671_v26 = vpop.xlane.xlu1 %670 }
 0x448   : > { %v674_v27 = vadd.f32 1e-05, %v672_v25  ;;  %v673_v28 = vmul.f32 0.03125, %v671_v26 }
 0x44a   : > { %968 = vrsqrt.f32 %v674_v27  ;;  %v675_v29 = vadd.f32 1e-05, %v673_v28 }
 0x44c   : > { %970 = vrsqrt.f32 %v675_v29 }
 0x454   : > { %v969_v30 = vpop.eup %968 }
 0x455   : > { %v678_v15 = vmul.f32 %v969_v30, %v662_v17 }
 0x456   : > { %v971_v32 = vpop.eup %970 }
 0x457   : > { %v686_v33 = vmul.f32 %v876_v31, %v678_v15  ;;  %v679_v34 = vmul.f32 %v971_v32, %v663_v19 }
 0x459   : > { %v687_v36 = vmul.f32 %v876_v31, %v679_v34  ;;  %v694_v37 = vadd.f32 %v877_v35, %v686_v33 }
 0x45b   : > { %v695_v38 = vadd.f32 %v877_v35, %v687_v36 }
 0x45d   : > { %v700_v39 = vpack.c.bf16 %v695_v38, %v694_v37 }
 0x45f   : > { %931 = vmatmul.mubr.msk.bf16.vlgmr.msra.gmra.mrb[4].mxu0 %vm409_vm0, %v700_v39 }
 0x532   : > { %v750_v40 = vpop.f32.mrb[4].mxu0 }
 0x533   : > { %758 = vst.msk [vmem:[%s402_s12] sm:$0xff] %vm757_vm2, %v750_v40  ;;  %v932_v41 = vpop.f32.mrb[5].mxu0 }
 0x534   : > { %v753_v42 = vpop.f32.mrb[6].mxu0 }
 0x535   : > { %759 = vst.msk [vmem:[%s402_s12 + $0x8] sm:$0xff] %vm757_vm2, %v753_v42  ;;  %v933_v43 = vpop.f32.mrb[7].mxu0 }
 0x536 PF: > { %s22_s17 = sadd.s32 1, %s978_s17  }
 0x537   : > { %p19_p4 = scmp.ge.s32.totalorder %s22_s17, 4  }
 0x539   :  { %21 = sbr.rel (!%p19_p4) target bundleno = 1 (0x1), region = 102 }

// kernel: model_forward.10
= control target key start
LH: loop header
LB: loop body
LE: loop exit
PB: predicated region body
PF: predicated region fallthrough
CT: control target
= control target key end

     0   :  { %s848_s30 = smov 0   ;;  %s941_s0 = inlined_call_operand.vmem [shape: f32[32,32], index: 0, kind: input, shape index: {}]   ;;  %s942_s1 = inlined_call_operand.vmem [shape: f32[1,32], index: 1, kind: input, shape index: {}]   ;;  %s943_s2 = inlined_call_operand.vmem [shape: f32[1,32], index: 2, kind: input, shape index: {}]   ;;  %s944_s3 = inlined_call_operand.vmem [shape: bf16[32,128], index: 3, kind: input, shape index: {}]   ;;  %s945_s4 = inlined_call_operand.vmem [shape: f32[1,128], index: 4, kind: input, shape index: {}]   ;;  %s946_s5 = inlined_call_operand.vmem [shape: bf16[128,32], index: 5, kind: input, shape index: {}]   ;;  %s947_s6 = inlined_call_operand.vmem [shape: f32[1,32], index: 6, kind: input, shape index: {}]   ;;  %s948_s7 = inlined_call_operand.vmem [shape: f32[1,32], index: 7, kind: input, shape index: {}]   ;;  %s949_s8 = inlined_call_operand.vmem [shape: f32[1,32], index: 8, kind: input, shape index: {}]   ;;  %s950_s9 = inlined_call_operand.vmem [shape: f32[32,32], index: 9, kind: output, shape index: {}]  }
   0x1 LB: > { %s684_s10 = sadd.s32 4294967295, %s794_s30   ;;  %p688_p0 = scmp.ge.s32.totalorder %s794_s30, 1  ;;  %s794_s30 = sphi %s848_s30, %s19_s30  }
   0x2   : > { %p288_p1 = scmp.lt.s32.totalorder %s794_s30, 3 }
   0x4   : > { %p289_p2 = pnand %p688_p0, %p288_p1 }
   0x5   : > { %s689_s11 = sshll.u32 (!%p289_p2), %s684_s10, 1  ;;  %vm341_vm0 = vcmask (!%p289_p2), 261120   ;;  %v762_v14 = vld [vmem:[%s944_s3] sm:$0xff] (!%p289_p2)   ;;  %v796_v15 = vmov (!%p289_p2), 0.0   ;;  %v763_v16 = vld [vmem:[%s944_s3 + $0x8] sm:$0xff] (!%p289_p2)   ;;  %vm797_vm1 = vmmov (!%p289_p2), 0  }
   0x6   : > { %292 = sbr.rel (%p289_p2) target bundleno = 1118 (0x45e), region = 56  ;;  %p325_p3 = scmp.lt.s32.totalorder (!%p289_p2), %s689_s11, 3  ;;  %724 = vmatprep.subr.bf16.mxu0 (!%p289_p2), %v796_v15  ;;  %732 = vmatprep.subr.bf16.mxu1 (!%p289_p2), %v796_v15  ;;  %v693_v25 = vld [vmem:[%s942_s1] ss:$0 sm:$0xff] (!%p289_p2)  ;;  %v765_v35 = vld [vmem:[%s946_s5 + $0x8] sm:$0xff] (!%p289_p2)   ;;  %v766_v36 = vld [vmem:[%s946_s5 + $0x10] sm:$0xff] (!%p289_p2)  }
   0x7   : > { %725 = vmatpush3.bf16.msra.mxu0 (!%p289_p2), %v762_v14  ;;  %728 = vmatprep.mubr.msk.bf16.mxu0 (!%p289_p2), %vm797_vm1, %v796_v15  ;;  %v694_v29 = vld [vmem:[%s943_s2] ss:$0 sm:$0xff] (!%p289_p2)  ;;  %v767_v37 = vld [vmem:[%s946_s5 + $0x18] sm:$0xff] (!%p289_p2)   ;;  %v769_v39 = vld [vmem:[%s946_s5 + $0x28] sm:$0xff] (!%p289_p2)  }
   0x8   : > { %726 = vmatprep.subr.bf16.mxu0 (!%p289_p2), %v796_v15  ;;  %748 = vmatprep.mubr.msk.bf16.mxu1 (!%p289_p2), %vm797_vm1, %v796_v15  ;;  %v764_v34 = vld [vmem:[%s946_s5] sm:$0xff] (!%p289_p2)   ;;  %v770_v40 = vld [vmem:[%s946_s5 + $0x30] sm:$0xff] (!%p289_p2)   ;;  %v771_v41 = vld [vmem:[%s946_s5 + $0x38] sm:$0xff] (!%p289_p2)  }
   0x9   : > { %733 = vmatpush3.bf16.msra.mxu1 (!%p289_p2), %v764_v34  ;;  %v768_v38 = vld [vmem:[%s946_s5 + $0x20] sm:$0xff] (!%p289_p2)  }
   0xa   : > { %734 = vmatprep.subr.bf16.mxu1 (!%p289_p2), %v796_v15  ;;  %v695_v42 = vld [vmem:[%s945_s4] ss:$0 sm:$0xff] (!%p289_p2) }
   0xb   : > { %727 = vmatpush3.bf16.msra.mxu0 (!%p289_p2), %v763_v16  ;;  %v699_v62 = vld [vmem:[%s947_s6] ss:$0 sm:$0xff] (!%p289_p2) }
   0xd   : > { %s952_s11 = smov (!%p325_p3, %s689_s11), 3  ;;  %735 = vmatpush3.bf16.msra.mxu1 %v765_v35 }
   0xe   : > { %s690_s12 = sshll.u32 %s952_s11, 3  ;;  %736 = vmatprep.subr.bf16.mxu1 %v796_v15 }
   0xf   : > { %s328_s15 = scalar_lea.vmem %s941_s0, %s690_s12  ;;  %s334_s14 = scalar_lea.vmem %s950_s9, %s690_s12 }
  0x10   : > { %v864_v0 = vld [vmem:[%s328_s15] sm:$0xff]  ;;  %v866_v1 = vld [vmem:[%s328_s15 + $0x8] sm:$0xff] }
  0x11   : > { %v342_v2 = vsel %vm341_vm0, %v864_v0, 0.0  ;;  %v345_v3 = vsel %vm341_vm0, %v866_v1, 0.0  ;;  %737 = vmatpush3.bf16.msra.mxu1 %v766_v36 }
  0x12   : > { %343 = vadd.xlane.f32.xlu0 %v342_v2  ;;  %738 = vmatprep.subr.bf16.mxu1 %v796_v15 }
  0x15   : > { %739 = vmatpush3.bf16.msra.mxu1 %v767_v37 }
  0x16   : > { %346 = vadd.xlane.f32.xlu0 %v345_v3  ;;  %740 = vmatprep.subr.bf16.mxu1 %v796_v15 }
  0x19   : > { %741 = vmatpush3.bf16.msra.mxu1 %v768_v38 }
  0x1a   : > { %742 = vmatprep.subr.bf16.mxu1 %v796_v15 }
  0x1d   : > { %743 = vmatpush3.bf16.msra.mxu1 %v769_v39 }
  0x1e   : > { %744 = vmatprep.subr.bf16.mxu1 %v796_v15 }
  0x21   : > { %745 = vmatpush3.bf16.msra.mxu1 %v770_v40 }
  0x22   : > { %746 = vmatprep.subr.bf16.mxu1 %v796_v15 }
  0x25   : > { %747 = vmatpush3.bf16.msra.mxu1 %v771_v41 }
  0x9f   : > { %v344_v4 = vpop.xlane.xlu0 %343 }
  0xa0   : > { %v349_v5 = vmul.f32 0.03125, %v344_v4 }
  0xa2   : > { %v351_v6 = vsub.f32 %v864_v0, %v349_v5 }
  0xa3   : > { %v347_v7 = vpop.xlane.xlu0 %346 }
  0xa4   : > { %v350_v8 = vmul.f32 0.03125, %v347_v7  ;;  %v353_v9 = vmul.f32 %v351_v6, %v351_v6 }
  0xa6   : > { %v352_v10 = vsub.f32 %v866_v1, %v350_v8  ;;  %v355_v11 = vsel %vm341_vm0, %v353_v9, 0.0 }
  0xa7   : > { %356 = vadd.xlane.f32.xlu1 %v355_v11 }
  0xa8   : > { %v354_v12 = vmul.f32 %v352_v10, %v352_v10 }
  0xaa   : > { %v358_v13 = vsel %vm341_vm0, %v354_v12, 0.0 }
  0xab   : > { %359 = vadd.xlane.f32.xlu1 %v358_v13 }
 0x134   : > { %v357_v17 = vpop.xlane.xlu1 %356 }
 0x135   : > { %v361_v18 = vmul.f32 0.03125, %v357_v17 }
 0x137   : > { %v363_v19 = vadd.f32 1e-05, %v361_v18 }
 0x138   : > { %v360_v20 = vpop.xlane.xlu1 %359 }
 0x139   : > { %772 = vrsqrt.f32 %v363_v19  ;;  %v362_v21 = vmul.f32 0.03125, %v360_v20 }
 0x13b   : > { %v364_v22 = vadd.f32 1e-05, %v362_v21 }
 0x13d   : > { %774 = vrsqrt.f32 %v364_v22 }
 0x143   : > { %v773_v23 = vpop.eup %772 }
 0x144   : > { %v367_v24 = vmul.f32 %v773_v23, %v351_v6 }
 0x146   : > { %v375_v28 = vmul.f32 %v693_v25, %v367_v24 }
 0x147   : > { %v775_v26 = vpop.eup %774 }
 0x148   : > { %v368_v27 = vmul.f32 %v775_v26, %v352_v10  ;;  %v383_v31 = vadd.f32 %v694_v29, %v375_v28  ;;  %v708_v28 = vld [vmem:[%s948_s7] ss:$0 sm:$0xff] }
 0x14a   : > { %v376_v30 = vmul.f32 %v693_v25, %v368_v27 }
 0x14c   : > { %v384_v32 = vadd.f32 %v694_v29, %v376_v30 }
 0x14e   : > { %v389_v33 = vpack.c.bf16 %v384_v32, %v383_v31  ;;  %v709_v31 = vld [vmem:[%s949_s8] ss:$0 sm:$0xff] }
 0x150   : > { %729 = vmatmul.mubr.msk.bf16.vlgmr.msra.gmra.mrb[0].mxu0 %vm341_vm0, %v389_v33 }
 0x223   : > { %v446_v43 = vpop.f32.mrb[0].mxu0 }
 0x224   : > { %v447_v44 = vadd.f32 %v695_v42, %v446_v43  ;;  %v730_v45 = vpop.f32.mrb[1].mxu0 }
 0x225   : > { %v449_v46 = vpop.f32.mrb[2].mxu0 }
 0x226   : > { %v453_v47 = vsub.f32 0.0, %v447_v44  ;;  %v450_v48 = vadd.f32 %v695_v42, %v449_v46  ;;  %v731_v49 = vpop.f32.mrb[3].mxu0 }
 0x228   : > { %v455_v50 = vmul.f32 1.442695, %v453_v47  ;;  %v454_v51 = vsub.f32 0.0, %v450_v48 }
 0x22a   : > { %776 = vpow2.f32 %v455_v50  ;;  %v457_v52 = vmul.f32 1.442695, %v454_v51 }
 0x22c   : > { %778 = vpow2.f32 %v457_v52 }
 0x234   : > { %v777_v53 = vpop.eup %776 }
 0x235   : > { %v459_v54 = vadd.f32 1.0, %v777_v53 }
 0x236   : > { %v779_v55 = vpop.eup %778 }
 0x237   : > { %780 = vrcp.f32 %v459_v54  ;;  %v460_v56 = vadd.f32 1.0, %v779_v55 }
 0x239   : > { %782 = vrcp.f32 %v460_v56 }
 0x241   : > { %v781_v57 = vpop.eup %780 }
 0x242   : > { %v463_v59 = vmul.f32 %v781_v57, %v447_v44 }
 0x243   : > { %v783_v58 = vpop.eup %782 }
 0x244   : > { %v464_v60 = vmul.f32 %v783_v58, %v450_v48 }
 0x246   : > { %v481_v61 = vpack.c.bf16 %v464_v60, %v463_v59 }
 0x248   : > { %749 = vmatmul.mubr.bf16.vlgmr.msra.gmra.mrb[0].mxu1 %v481_v61 }
 0x31b   : > { %v571_v63 = vpop.f32.mrb[0].mxu1 }
 0x31c   : > { %v572_v2 = vadd.f32 %v699_v62, %v571_v63  ;;  %v750_v3 = vpop.f32.mrb[1].mxu1 }
 0x31d   : > { %v574_v4 = vpop.f32.mrb[2].mxu1 }
 0x31e   : > { %v578_v5 = vmul.f32 0.5, %v572_v2  ;;  %v575_v6 = vadd.f32 %v699_v62, %v574_v4  ;;  %v751_v7 = vpop.f32.mrb[3].mxu1 }
 0x320   : > { %v579_v8 = vmul.f32 0.5, %v575_v6  ;;  %v580_v9 = vadd.f32 %v578_v5, %v864_v0 }
 0x322   : > { %v584_v10 = vsel %vm341_vm0, %v580_v9, 0.0  ;;  %v581_v11 = vadd.f32 %v579_v8, %v866_v1 }
 0x323   : > { %585 = vadd.xlane.f32.xlu0 %v584_v10 }
 0x324   : > { %v587_v12 = vsel %vm341_vm0, %v581_v11, 0.0 }
 0x325   : > { %588 = vadd.xlane.f32.xlu1 %v587_v12 }
 0x3b0   : > { %v586_v13 = vpop.xlane.xlu0 %585 }
 0x3b1   : > { %v590_v14 = vmul.f32 0.03125, %v586_v13 }
 0x3b2   : > { %v589_v15 = vpop.xlane.xlu1 %588 }
 0x3b3   : > { %v592_v16 = vsub.f32 %v580_v9, %v590_v14  ;;  %v591_v17 = vmul.f32 0.03125, %v589_v15 }
 0x3b5   : > { %v593_v18 = vsub.f32 %v581_v11, %v591_v17  ;;  %v594_v19 = vmul.f32 %v592_v16, %v592_v16 }
 0x3b7   : > { %v596_v20 = vsel %vm341_vm0, %v594_v19, 0.0  ;;  %v595_v21 = vmul.f32 %v593_v18, %v593_v18 }
 0x3b8   : > { %597 = vadd.xlane.f32.xlu0 %v596_v20 }
 0x3b9   : > { %v599_v0 = vsel %vm341_vm0, %v595_v21, 0.0 }
 0x3ba   : > { %600 = vadd.xlane.f32.xlu1 %v599_v0 }
 0x445   : > { %v598_v1 = vpop.xlane.xlu0 %597 }
 0x446   : > { %v602_v22 = vmul.f32 0.03125, %v598_v1 }
 0x447   : > { %v601_v23 = vpop.xlane.xlu1 %600 }
 0x448   : > { %v604_v24 = vadd.f32 1e-05, %v602_v22  ;;  %v603_v25 = vmul.f32 0.03125, %v601_v23 }
 0x44a   : > { %784 = vrsqrt.f32 %v604_v24  ;;  %v605_v26 = vadd.f32 1e-05, %v603_v25 }
 0x44c   : > { %786 = vrsqrt.f32 %v605_v26 }
 0x454   : > { %v785_v27 = vpop.eup %784 }
 0x455   : > { %v608_v29 = vmul.f32 %v785_v27, %v592_v16 }
 0x456   : > { %v787_v30 = vpop.eup %786 }
 0x457   : > { %v616_v32 = vmul.f32 %v708_v28, %v608_v29  ;;  %v609_v33 = vmul.f32 %v787_v30, %v593_v18 }
 0x459   : > { %v624_v34 = vadd.f32 %v709_v31, %v616_v32  ;;  %v617_v35 = vmul.f32 %v708_v28, %v609_v33 }
 0x45b   : > { %626 = vst.msk [vmem:[%s334_s14] sm:$0xff] %vm341_vm0, %v624_v34  ;;  %v625_v36 = vadd.f32 %v709_v31, %v617_v35 }
 0x45d   : > { %627 = vst.msk [vmem:[%s334_s14 + $0x8] sm:$0xff] %vm341_vm0, %v625_v36 }
 0x45e PF: > { %s19_s30 = sadd.s32 1, %s794_s30  }
 0x45f   : > { %p16_p4 = scmp.ge.s32.totalorder %s19_s30, 4  }
 0x461   :  { %18 = sbr.rel (!%p16_p4) target bundleno = 1 (0x1), region = 86 }

// kernel: model_forward.9
= control target key start
LH: loop header
LB: loop body
LE: loop exit
PB: predicated region body
PF: predicated region fallthrough
CT: control target
= control target key end

     0   :  { %s2144_s24 = smov 0   ;;  %s2381_s0 = inlined_call_operand.vmem [shape: f32[2,16,96], index: 0, kind: input, shape index: {}]   ;;  %s2382_s1 = inlined_call_operand.vmem [shape: bf16[2,4,16,16], index: 1, kind: input, shape index: {}]   ;;  %s2383_s2 = inlined_call_operand.vmem [shape: f32[2,16,32], index: 2, kind: input, shape index: {}]   ;;  %s2384_s3 = inlined_call_operand.vmem [shape: bf16[32,32], index: 3, kind: input, shape index: {}]   ;;  %s2385_s4 = inlined_call_operand.vmem [shape: f32[1,32], index: 4, kind: input, shape index: {}]   ;;  %s2386_s5 = inlined_call_operand.vmem [shape: f32[1,32], index: 5, kind: input, shape index: {}]   ;;  %s2387_s6 = inlined_call_operand.vmem [shape: f32[1,32], index: 6, kind: input, shape index: {}]   ;;  %s2388_s7 = inlined_call_operand.vmem [shape: bf16[32,128], index: 7, kind: input, shape index: {}]   ;;  %s2389_s8 = inlined_call_operand.vmem [shape: f32[1,128], index: 8, kind: input, shape index: {}]   ;;  %s2390_s9 = inlined_call_operand.vmem [shape: f32[7,64], index: 9, kind: input, shape index: {}]   ;;  %s2391_s10 = inlined_call_operand.vmem [shape: f32[1,64], index: 10, kind: input, shape index: {}]   ;;  %s2392_s11 = inlined_call_operand.vmem [shape: f32[1,64], index: 11, kind: input, shape index: {}]   ;;  %s2393_s12 = inlined_call_operand.vmem [shape: f32[1,64], index: 12, kind: input, shape index: {}]   ;;  %s2394_s13 = inlined_call_operand.vmem [shape: f32[1,64], index: 13, kind: input, shape index: {}]   ;;  %s2395_s14 = inlined_call_operand.vmem [shape: f32[1,64], index: 14, kind: input, shape index: {}]   ;;  %s2396_s15 = inlined_call_operand.vmem [shape: bf16[64,32], index: 15, kind: input, shape index: {}]   ;;  %s2397_s16 = inlined_call_operand.vmem [shape: f32[1,32], index: 16, kind: input, shape index: {}]   ;;  %s2398_s17 = inlined_call_operand.vmem [shape: f32[2,16,32], index: 17, kind: output, shape index: {}]  }
   0x1   :  { %2399 = sst [smem:[#allocation3_spill]] %s2381_s0 }
   0x2   :  { %2400 = sst [smem:[#allocation4_spill]] %s2382_s1 }
   0x3 LB: > { %s1761_s25 = sadd.s32 4294967295, %s2039_s24   ;;  %p1765_p0 = scmp.ge.s32.totalorder %s2039_s24, 1  ;;  %s2039_s24 = sphi %s2144_s24, %s27_s24  }
   0x4   : > { %p507_p1 = scmp.lt.s32.totalorder %s2039_s24, 3 }
   0x6   : > { %p508_p2 = pnand %p1765_p0, %p507_p1 }
   0x7   : > { %p569_p3 = scmp.lt.s32.totalorder (!%p508_p2), %s1761_s25, 1  ;;  %v2041_v0 = vmov (!%p508_p2), 0.0   ;;  %vm2042_vm0 = vmmov (!%p508_p2), 0   ;;  %s2401_s29 = sld [smem:[#allocation3_spill]] (!%p508_p2)  ;;  %vm608_vm1 = vcmask (!%p508_p2), 64512   ;;  %vm662_vm2 = vcmask (!%p508_p2), 130048  }
   0x8   : > { %511 = sbr.rel (%p508_p2) target bundleno = 3928 (0xf58), region = 88  ;;  %1860 = vmatprep.subr.bf16.mxu0 (!%p508_p2), %v2041_v0  ;;  %1862 = vmatprep.mubr.msk.bf16.mxu0 (!%p508_p2), %vm2042_vm0, %v2041_v0  ;;  %s2043_s30 = smov (!%p508_p2), 96   ;;  %v600_v40 = vld [vmem:[%s2384_s3] sm:$0xf] (!%p508_p2)  ;;  %vm865_vm3 = vcmask (!%p508_p2), 1043456   ;;  %vm1326_vm4 = vcmask (!%p508_p2), 261120  }
   0x9   : > { %1866 = vmatprep.subr.bf16.mxu1 (!%p508_p2), %v2041_v0  ;;  %1868 = vmatprep.mubr.msk.bf16.mxu1 (!%p508_p2), %vm2042_vm0, %v2041_v0  ;;  %s2402_s20 = sld [smem:[#allocation4_spill]] (!%p508_p2)  ;;  %s2044_s22 = smov (!%p508_p2), 64   ;;  %v914_v41 = vsel (!%p508_p2), %vm865_vm3, %v600_v40, 0  ;;  %vm1458_vm5 = vcmask (!%p508_p2), 518144   ;;  %vm1460_vm6 = vcmask (!%p508_p2), 523264  }
   0xa   : > { %s2045_s23 = smov (!%p508_p2), 88   ;;  %s2050_s1 = smov (!%p508_p2), 48   ;;  %1459 = vst.msk [vmem:[#allocation2] sm:$0x7] (!%p508_p2), %vm1458_vm5, %v2041_v0  ;;  %1463 = vst.msk [vmem:[#allocation2 + $0x13] sm:$0x7] (!%p508_p2), %vm1458_vm5, %v2041_v0 }
   0xf   : > { %s2404_s25 = smov (!%p569_p3, %s1761_s25), 1 }
  0x10   : > { %s2158_s26 = sshll.u32 %s2404_s25, 4  ;;  %s1806_s18 = sshll.u32 %s2404_s25, 5 }
  0x11   : > { %s573_s0 = scalar_lea.vmem %s2401_s29, %s2158_s26  ;;  %s2176_s21 = scalar_lea.vmem %s2402_s20, %s1806_s18 }
  0x12   : > { %v590_v1 = vld [vmem:[%s573_s0] sm:$0xff]  ;;  %v591_v2 = vld [vmem:[%s573_s0 + $0x8] sm:$0xff]  ;;  %s2046_s25 = smov 120   ;;  %s2047_s29 = smov 56  }
  0x13   : > { %v2164_v3 = vpack.c.bf16 %v591_v2, %v590_v1  ;;  %v1810_v6 = vld [vmem:[%s2176_s21] sm:$0xff]   ;;  %v1825_v47 = vld [vmem:[%s2176_s21 + $0x8] sm:$0xff]   ;;  %s2048_s0 = smov 80   ;;  %s2051_s20 = smov 72  }
  0x14   : > { %v1811_v7 = vunpack.c.l.bf16 %v1810_v6  ;;  %v1812_v11 = vunpack.c.h.bf16 %v1810_v6  ;;  %v1815_v48 = vunpack.c.l.bf16 %v1825_v47  ;;  %v1816_v52 = vunpack.c.h.bf16 %v1825_v47  ;;  %s583_s18 = scalar_lea.vmem %s2383_s2, %s2158_s26 }
  0x15   : > { %606 = vrot.lane.b32.xlu0 %v2164_v3, %s2043_s30  ;;  %s2049_s30 = smov 112  }
  0x87   : > { %v607_v4 = vpop.permute.xlu0 %606 }
  0x88   : > { %v613_v5 = vsel %vm608_vm1, %v607_v4, 0 }
  0x89   : > { %1861 = vmatpush3.bf16.xpose.msra.mxu0 %v613_v5 }
  0x8a   : > { %1890 = vmatprep.subr.bf16.mxu0 %v2041_v0 }
  0x90   : > { %1863 = vmatmul.mubr.msk.bf16.vlgmr.msra.gmra.mrb[0].mxu0 %vm608_vm1, %v2164_v3 }
  0x91   : > { %1892 = vmatprep.mubr.msk.bf16.mxu0 %vm2042_vm0, %v2041_v0  ;;  %1891 = vmatpush3.bf16.msra.mxu0 %v914_v41 }
  0x92   : > { %1902 = vmatprep.subr.bf16.mxu0 %v2041_v0 }
 0x163   : > { %v649_v8 = vpop.f32.mrb[0].mxu0 }
 0x164   : > { %v656_v9 = vmul.f32 0.35355338, %v649_v8  ;;  %v1864_v10 = vpop.f32.mrb[1].mxu0 }
 0x165   : > { %v652_v12 = vpop.f32.mrb[2].mxu0 }
 0x166   : > { %v657_v13 = vmul.f32 0.35355338, %v652_v12  ;;  %v1865_v14 = vpop.f32.mrb[3].mxu0  ;;  %v660_v15 = vadd.f32 %v1811_v7, %v656_v9 }
 0x168   : > { %v663_v16 = vsel %vm662_vm2, %v660_v15, -inf  ;;  %v661_v17 = vadd.f32 %v1812_v11, %v657_v13 }
 0x169   : > { %664 = vmax.xlane.f32.xlu0 %v663_v16 }
 0x16a   : > { %v666_v18 = vsel %vm662_vm2, %v661_v17, -inf }
 0x16b   : > { %667 = vmax.xlane.f32.xlu1 %v666_v18 }
 0x17c   : > { %686 = vrot.lane.b32.xlu1 %v2164_v3, %s2044_s22 }
 0x1f6   : > { %v665_v19 = vpop.xlane.xlu0 %664 }
 0x1f7   : > { %v669_v20 = vsub.f32 %v660_v15, %v665_v19 }
 0x1f8   : > { %v668_v21 = vpop.xlane.xlu1 %667 }
 0x1f9   : > { %v671_v22 = vmul.f32 1.442695, %v669_v20  ;;  %v670_v23 = vsub.f32 %v661_v17, %v668_v21  ;;  %v601_v17 = vld [vmem:[%s2384_s3 + $0x4] sm:$0xf] }
 0x1fa   : > { %v867_v21 = vsel %vm865_vm3, %v601_v17, 0 }
 0x1fb   : > { %1979 = vpow2.f32 %v671_v22  ;;  %v673_v24 = vmul.f32 1.442695, %v670_v23 }
 0x1fc   : > { %v687_v25 = vpop.permute.xlu1 %686 }
 0x1fd   : > { %1981 = vpow2.f32 %v673_v24  ;;  %1867 = vmatpush3.bf16.msra.mxu1 %v687_v25 }
 0x1fe   : > { %1872 = vmatprep.subr.bf16.mxu1 %v2041_v0 }
 0x205   : > { %v1980_v26 = vpop.eup %1979 }
 0x206   : > { %v675_v27 = vsel %vm662_vm2, %v1980_v26, 0.0 }
 0x207   : > { %v1982_v28 = vpop.eup %1981  ;;  %676 = vadd.xlane.f32.xlu1 %v675_v27 }
 0x208   : > { %v678_v29 = vsel %vm662_vm2, %v1982_v28, 0.0 }
 0x20b   : > { %679 = vadd.xlane.f32.xlu1 %v678_v29 }
 0x21c   : > { %736 = vrot.lane.b32.xlu1 %v2164_v3, %s2045_s23  ;;  %s2052_s23 = smov 104  }
 0x220   : > { %734 = vrot.lane.b32.xlu1 %v2164_v3, %s2046_s25 }
 0x294   : > { %v677_v30 = vpop.xlane.xlu1 %676 }
 0x295   : > { %1983 = vrcp.f32 %v677_v30 }
 0x298   : > { %v680_v31 = vpop.xlane.xlu1 %679 }
 0x299   : > { %1985 = vrcp.f32 %v680_v31 }
 0x29c   : > { %v737_v34 = vpop.permute.xlu1 %736 }
 0x29d   : > { %v742_v37 = vsel %vm608_vm1, %v737_v34, 0 }
 0x29f   : > { %v1984_v32 = vpop.eup %1983 }
 0x2a0   : > { %v683_v35 = vmul.f32 %v1984_v32, %v1980_v26  ;;  %v735_v39 = vpop.permute.xlu1 %734 }
 0x2a3   : > { %v1986_v33 = vpop.eup %1985 }
 0x2a4   : > { %v684_v36 = vmul.f32 %v1986_v33, %v1982_v28 }
 0x2a6   : > { %v685_v38 = vpack.c.bf16 %v684_v36, %v683_v35  ;;  %v1826_v36 = vld [vmem:[%s2176_s21 + $0x10] sm:$0xff]  }
 0x2a7   : > { %v1820_v41 = vunpack.c.h.bf16 %v1826_v36 }
 0x2a8   : > { %1869 = vmatmul.mubr.msk.bf16.vlgmr.msra.gmra.mrb[0].mxu1 %vm662_vm2, %v685_v38 }
 0x2a9   : > { %1873 = vmatpush3.bf16.xpose.msra.mxu1 %v742_v37  ;;  %1874 = vmatprep.mubr.msk.bf16.mxu1 %vm2042_vm0, %v2041_v0  ;;  %v1819_v37 = vunpack.c.l.bf16 %v1826_v36 }
 0x2aa   : > { %1878 = vmatprep.subr.bf16.mxu1 %v2041_v0 }
 0x2b0   : > { %1875 = vmatmul.mubr.msk.bf16.vlgmr.msra.gmra.mrb[4].mxu1 %vm608_vm1, %v735_v39 }
 0x2b1   : > { %1880 = vmatprep.mubr.msk.bf16.mxu1 %vm2042_vm0, %v2041_v0 }
 0x37b   : > { %v726_v42 = vpop.f32.mrb[0].mxu1 }
 0x37c   : > { %v1870_v43 = vpop.f32.mrb[1].mxu1 }
 0x37d   : > { %v729_v44 = vpop.f32.mrb[2].mxu1 }
 0x37e   : > { %v733_v45 = vpack.c.bf16 %v729_v44, %v726_v42  ;;  %v1871_v46 = vpop.f32.mrb[3].mxu1 }
 0x380   : > { %1893 = vmatmul.mubr.msk.bf16.vlgmr.msra.gmra.mrb[4].mxu0 %vm608_vm1, %v733_v45 }
 0x381   : > { %1904 = vmatprep.mubr.msk.bf16.mxu0 %vm2042_vm0, %v2041_v0 }
 0x383   : > { %v778_v49 = vpop.f32.mrb[4].mxu1 }
 0x384   : > { %v785_v50 = vmul.f32 0.35355338, %v778_v49  ;;  %v1876_v51 = vpop.f32.mrb[5].mxu1 }
 0x385   : > { %v781_v53 = vpop.f32.mrb[6].mxu1 }
 0x386   : > { %v786_v54 = vmul.f32 0.35355338, %v781_v53  ;;  %v1877_v55 = vpop.f32.mrb[7].mxu1  ;;  %v789_v56 = vadd.f32 %v1815_v48, %v785_v50 }
 0x388   : > { %v791_v57 = vsel %vm662_vm2, %v789_v56, -inf  ;;  %v790_v58 = vadd.f32 %v1816_v52, %v786_v54 }
 0x389   : > { %792 = vmax.xlane.f32.xlu0 %v791_v57 }
 0x38a   : > { %v794_v59 = vsel %vm662_vm2, %v790_v58, -inf }
 0x38b   : > { %795 = vmax.xlane.f32.xlu1 %v794_v59 }
 0x416   : > { %v793_v60 = vpop.xlane.xlu0 %792 }
 0x417   : > { %v797_v61 = vsub.f32 %v789_v56, %v793_v60 }
 0x418   : > { %v796_v62 = vpop.xlane.xlu1 %795 }
 0x419   : > { %v799_v63 = vmul.f32 1.442695, %v797_v61  ;;  %v798_v1 = vsub.f32 %v790_v58, %v796_v62 }
 0x41b   : > { %1987 = vpow2.f32 %v799_v63  ;;  %v801_v2 = vmul.f32 1.442695, %v798_v1 }
 0x41d   : > { %1989 = vpow2.f32 %v801_v2 }
 0x425   : > { %v1988_v4 = vpop.eup %1987 }
 0x426   : > { %v803_v5 = vsel %vm662_vm2, %v1988_v4, 0.0 }
 0x427   : > { %v1990_v6 = vpop.eup %1989  ;;  %804 = vadd.xlane.f32.xlu0 %v803_v5 }
 0x428   : > { %v806_v7 = vsel %vm662_vm2, %v1990_v6, 0.0 }
 0x42b   : > { %807 = vadd.xlane.f32.xlu0 %v806_v7 }
 0x441   : > { %814 = vrot.lane.b32.xlu0 %v2164_v3, %s2047_s29 }
 0x445   : > { %959 = vrot.lane.b32.xlu0 %v2164_v3, %s2048_s0 }
 0x449   : > { %957 = vrot.lane.b32.xlu0 %v2164_v3, %s2049_s30  ;;  %s588_s30 = scalar_lea.vmem %s2398_s17, %s2158_s26 }
 0x453   : > { %v950_v8 = vpop.f32.mrb[4].mxu0 }
 0x454   : > { %v1894_v9 = vpop.f32.mrb[5].mxu0 }
 0x455   : > { %v953_v10 = vpop.f32.mrb[6].mxu0 }
 0x456   : > { %v1895_v11 = vpop.f32.mrb[7].mxu0 }
 0x4b4   : > { %v805_v12 = vpop.xlane.xlu0 %804 }
 0x4b5   : > { %1991 = vrcp.f32 %v805_v12 }
 0x4b8   : > { %v808_v13 = vpop.xlane.xlu0 %807 }
 0x4b9   : > { %1993 = vrcp.f32 %v808_v13 }
 0x4bc   : > { %v815_v14 = vpop.permute.xlu0 %814 }
 0x4bd   : > { %1879 = vmatpush3.bf16.msra.mxu1 %v815_v14 }
 0x4be   : > { %1884 = vmatprep.subr.bf16.mxu1 %v2041_v0 }
 0x4bf   : > { %v1992_v15 = vpop.eup %1991 }
 0x4c0   : > { %v811_v18 = vmul.f32 %v1992_v15, %v1988_v4  ;;  %v960_v23 = vpop.permute.xlu0 %959  ;;  %v1827_v15 = vld [vmem:[%s2176_s21 + $0x18] sm:$0xff]   ;;  %s2053_s21 = smov 40  }
 0x4c1   : > { %v965_v27 = vsel %vm608_vm1, %v960_v23, 0 }
 0x4c3   : > { %v1994_v16 = vpop.eup %1993 }
 0x4c4   : > { %v812_v19 = vmul.f32 %v1994_v16, %v1990_v6  ;;  %v958_v29 = vpop.permute.xlu0 %957  ;;  %v1823_v16 = vunpack.c.l.bf16 %v1827_v15 }
 0x4c6   : > { %v813_v20 = vpack.c.bf16 %v812_v19, %v811_v18 }
 0x4c8   : > { %1881 = vmatmul.mubr.msk.bf16.vlgmr.msra.gmra.mrb[8].mxu1 %vm662_vm2, %v813_v20  ;;  %v1824_v20 = vunpack.c.h.bf16 %v1827_v15 }
 0x4c9   : > { %1885 = vmatpush3.bf16.msra.mxu1 %v867_v21  ;;  %1886 = vmatprep.mubr.msk.bf16.mxu1 %vm2042_vm0, %v2041_v0 }
 0x4ca   : > { %1896 = vmatprep.subr.bf16.mxu1 %v2041_v0 }
 0x59b   : > { %v854_v22 = vpop.f32.mrb[8].mxu1 }
 0x59c   : > { %v1882_v24 = vpop.f32.mrb[9].mxu1 }
 0x59d   : > { %v857_v25 = vpop.f32.mrb[10].mxu1 }
 0x59e   : > { %v861_v26 = vpack.c.bf16 %v857_v25, %v854_v22  ;;  %v1883_v28 = vpop.f32.mrb[11].mxu1 }
 0x5a0   : > { %1887 = vmatmul.mubr.msk.bf16.vlgmr.msra.gmra.mrb[12].mxu1 %vm608_vm1, %v861_v26 }
 0x5a1   : > { %1897 = vmatpush3.bf16.xpose.msra.mxu1 %v965_v27  ;;  %1898 = vmatprep.mubr.msk.bf16.mxu1 %vm2042_vm0, %v2041_v0 }
 0x5a2   : > { %1908 = vmatprep.subr.bf16.mxu1 %v2041_v0 }
 0x5a8   : > { %1899 = vmatmul.mubr.msk.bf16.vlgmr.msra.gmra.mrb[16].mxu1 %vm608_vm1, %v958_v29 }
 0x5a9   : > { %1910 = vmatprep.mubr.msk.bf16.mxu1 %vm2042_vm0, %v2041_v0 }
 0x673   : > { %v903_v30 = vpop.f32.mrb[12].mxu1 }
 0x674   : > { %v2229_v31 = vadd.f32 %v950_v8, %v903_v30  ;;  %v1888_v32 = vpop.f32.mrb[13].mxu1  ;;  %v602_v8 = vld [vmem:[%s2384_s3 + $0x8] sm:$0xf] }
 0x675   : > { %v906_v33 = vpop.f32.mrb[14].mxu1  ;;  %v1089_v9 = vsel %vm865_vm3, %v602_v8, 0 }
 0x676   : > { %v2231_v34 = vadd.f32 %v953_v10, %v906_v33  ;;  %v1889_v35 = vpop.f32.mrb[15].mxu1  ;;  %1909 = vmatpush3.bf16.msra.mxu1 %v1089_v9 }
 0x677   : > { %1920 = vmatprep.subr.bf16.mxu1 %v2041_v0 }
 0x67b   : > { %v1001_v38 = vpop.f32.mrb[16].mxu1 }
 0x67c   : > { %v1008_v39 = vmul.f32 0.35355338, %v1001_v38  ;;  %v1900_v40 = vpop.f32.mrb[17].mxu1 }
 0x67d   : > { %v1004_v42 = vpop.f32.mrb[18].mxu1  ;;  %v603_v40 = vld [vmem:[%s2384_s3 + $0xc] sm:$0xf] }
 0x67e   : > { %v1009_v43 = vmul.f32 0.35355338, %v1004_v42  ;;  %v1901_v44 = vpop.f32.mrb[19].mxu1  ;;  %v1012_v45 = vadd.f32 %v1819_v37, %v1008_v39 }
 0x680   : > { %v1014_v46 = vsel %vm662_vm2, %v1012_v45, -inf  ;;  %v1013_v47 = vadd.f32 %v1820_v41, %v1009_v43  ;;  %v1266_v41 = vsel %vm865_vm3, %v603_v40, 0 }
 0x681   : > { %1015 = vmax.xlane.f32.xlu1 %v1014_v46 }
 0x682   : > { %v1017_v48 = vsel %vm662_vm2, %v1013_v47, -inf }
 0x683   : > { %1018 = vmax.xlane.f32.xlu0 %v1017_v48 }
 0x692   : > { %1037 = vrot.lane.b32.xlu1 %v2164_v3, %s2050_s1 }
 0x70e   : > { %v1016_v49 = vpop.xlane.xlu1 %1015 }
 0x70f   : > { %v1020_v50 = vsub.f32 %v1012_v45, %v1016_v49 }
 0x710   : > { %v1019_v51 = vpop.xlane.xlu0 %1018 }
 0x711   : > { %v1022_v52 = vmul.f32 1.442695, %v1020_v50  ;;  %v1021_v53 = vsub.f32 %v1013_v47, %v1019_v51 }
 0x712   : > { %v1038_v54 = vpop.permute.xlu1 %1037 }
 0x713   : > { %1995 = vpow2.f32 %v1022_v52  ;;  %v1024_v55 = vmul.f32 1.442695, %v1021_v53  ;;  %1903 = vmatpush3.bf16.msra.mxu0 %v1038_v54 }
 0x714   : > { %1914 = vmatprep.subr.bf16.mxu0 %v2041_v0 }
 0x715   : > { %1997 = vpow2.f32 %v1024_v55 }
 0x71d   : > { %v1996_v56 = vpop.eup %1995 }
 0x71e   : > { %v1026_v57 = vsel %vm662_vm2, %v1996_v56, 0.0 }
 0x71f   : > { %v1998_v58 = vpop.eup %1997  ;;  %1027 = vadd.xlane.f32.xlu1 %v1026_v57 }
 0x720   : > { %v1029_v59 = vsel %vm662_vm2, %v1998_v58, 0.0 }
 0x723   : > { %1030 = vadd.xlane.f32.xlu1 %v1029_v59  ;;  %v1311_v59 = vld [vmem:[%s583_s18] sm:$0xff] }
 0x734   : > { %1136 = vrot.lane.b32.xlu1 %v2164_v3, %s2051_s20 }
 0x738   : > { %1134 = vrot.lane.b32.xlu1 %v2164_v3, %s2052_s23 }
 0x7ac   : > { %v1028_v60 = vpop.xlane.xlu1 %1027 }
 0x7ad   : > { %1999 = vrcp.f32 %v1028_v60 }
 0x7b0   : > { %v1031_v61 = vpop.xlane.xlu1 %1030 }
 0x7b1   : > { %2001 = vrcp.f32 %v1031_v61 }
 0x7b4   : > { %v1137_v1 = vpop.permute.xlu1 %1136 }
 0x7b5   : > { %v1142_v5 = vsel %vm608_vm1, %v1137_v1, 0  ;;  %v1312_v1 = vld [vmem:[%s583_s18 + $0x8] sm:$0xff] }
 0x7b7   : > { %v2000_v62 = vpop.eup %1999 }
 0x7b8   : > { %v1034_v2 = vmul.f32 %v2000_v62, %v1996_v56  ;;  %v1135_v7 = vpop.permute.xlu1 %1134  ;;  %v1786_v62 = vld [vmem:[%s2385_s4] ss:$0 sm:$0xff] }
 0x7bb   : > { %v2002_v63 = vpop.eup %2001 }
 0x7bc   : > { %v1035_v4 = vmul.f32 %v2002_v63, %v1998_v58 }
 0x7be   : > { %v1036_v6 = vpack.c.bf16 %v1035_v4, %v1034_v2 }
 0x7c0   : > { %1905 = vmatmul.mubr.msk.bf16.vlgmr.msra.gmra.mrb[8].mxu0 %vm662_vm2, %v1036_v6 }
 0x7c1   : > { %1915 = vmatpush3.bf16.xpose.msra.mxu0 %v1142_v5  ;;  %1916 = vmatprep.mubr.msk.bf16.mxu0 %vm2042_vm0, %v2041_v0 }
 0x7c2   : > { %1926 = vmatprep.subr.bf16.mxu0 %v2041_v0 }
 0x7c8   : > { %1917 = vmatmul.mubr.msk.bf16.vlgmr.msra.gmra.mrb[12].mxu0 %vm608_vm1, %v1135_v7 }
 0x7c9   : > { %1928 = vmatprep.mubr.msk.bf16.mxu0 %vm2042_vm0, %v2041_v0  ;;  %1927 = vmatpush3.bf16.msra.mxu0 %v1266_v41 }
 0x7ca   : > { %1940 = vmatprep.subr.bf16.mxu0 %v2041_v0 }
 0x893   : > { %v1077_v10 = vpop.f32.mrb[8].mxu0 }
 0x894   : > { %v1906_v11 = vpop.f32.mrb[9].mxu0 }
 0x895   : > { %v1080_v12 = vpop.f32.mrb[10].mxu0 }
 0x896   : > { %v1084_v13 = vpack.c.bf16 %v1080_v12, %v1077_v10  ;;  %v1907_v14 = vpop.f32.mrb[11].mxu0 }
 0x898   : > { %1911 = vmatmul.mubr.msk.bf16.vlgmr.msra.gmra.mrb[20].mxu1 %vm608_vm1, %v1084_v13 }
 0x899   : > { %1922 = vmatprep.mubr.msk.bf16.mxu1 %vm2042_vm0, %v2041_v0 }
 0x89b   : > { %v1178_v17 = vpop.f32.mrb[12].mxu0 }
 0x89c   : > { %v1185_v18 = vmul.f32 0.35355338, %v1178_v17  ;;  %v1918_v19 = vpop.f32.mrb[13].mxu0 }
 0x89d   : > { %v1181_v21 = vpop.f32.mrb[14].mxu0 }
 0x89e   : > { %v1186_v22 = vmul.f32 0.35355338, %v1181_v21  ;;  %v1919_v23 = vpop.f32.mrb[15].mxu0  ;;  %v1189_v24 = vadd.f32 %v1823_v16, %v1185_v18  ;;  %v1973_v21 = vld [vmem:[%s2388_s7] sm:$0xff]  }
 0x8a0   : > { %v1191_v25 = vsel %vm662_vm2, %v1189_v24, -inf  ;;  %v1190_v26 = vadd.f32 %v1824_v20, %v1186_v22  ;;  %v1974_v22 = vld [vmem:[%s2388_s7 + $0x8] sm:$0xff]  }
 0x8a1   : > { %1192 = vmax.xlane.f32.xlu0 %v1191_v25 }
 0x8a2   : > { %v1194_v27 = vsel %vm662_vm2, %v1190_v26, -inf }
 0x8a3   : > { %1195 = vmax.xlane.f32.xlu1 %v1194_v27 }
 0x92e   : > { %v1193_v28 = vpop.xlane.xlu0 %1192 }
 0x92f   : > { %v1197_v29 = vsub.f32 %v1189_v24, %v1193_v28 }
 0x930   : > { %v1196_v30 = vpop.xlane.xlu1 %1195 }
 0x931   : > { %v1199_v32 = vmul.f32 1.442695, %v1197_v29  ;;  %v1198_v33 = vsub.f32 %v1190_v26, %v1196_v30 }
 0x933   : > { %2003 = vpow2.f32 %v1199_v32  ;;  %v1201_v35 = vmul.f32 1.442695, %v1198_v33  ;;  %v1787_v32 = vld [vmem:[%s2386_s5] ss:$0 sm:$0xff] }
 0x935   : > { %2005 = vpow2.f32 %v1201_v35 }
 0x93d   : > { %v2004_v36 = vpop.eup %2003 }
 0x93e   : > { %v1203_v37 = vsel %vm662_vm2, %v2004_v36, 0.0 }
 0x93f   : > { %v2006_v38 = vpop.eup %2005  ;;  %1204 = vadd.xlane.f32.xlu0 %v1203_v37  ;;  %v1788_v37 = vld [vmem:[%s2387_s6] ss:$0 sm:$0xff] }
 0x940   : > { %v1206_v39 = vsel %vm662_vm2, %v2006_v38, 0.0 }
 0x943   : > { %1207 = vadd.xlane.f32.xlu0 %v1206_v39 }
 0x959   : > { %1214 = vrot.lane.b32.xlu0 %v2164_v3, %s2053_s21 }
 0x96b   : > { %v1125_v42 = vpop.f32.mrb[20].mxu1 }
 0x96c   : > { %v1132_v43 = vadd.f32 %v1125_v42, %v2229_v31  ;;  %v1912_v44 = vpop.f32.mrb[21].mxu1  ;;  %v1789_v42 = vld [vmem:[%s2389_s8] ss:$0 sm:$0xff] }
 0x96d   : > { %v1128_v45 = vpop.f32.mrb[22].mxu1 }
 0x96e   : > { %v1133_v46 = vadd.f32 %v1128_v45, %v2231_v34  ;;  %v1913_v47 = vpop.f32.mrb[23].mxu1 }
 0x9cc   : > { %v1205_v48 = vpop.xlane.xlu0 %1204 }
 0x9cd   : > { %2007 = vrcp.f32 %v1205_v48 }
 0x9d0   : > { %v1208_v3 = vpop.xlane.xlu0 %1207 }
 0x9d1   : > { %2009 = vrcp.f32 %v1208_v3 }
 0x9d4   : > { %v1215_v49 = vpop.permute.xlu0 %1214 }
 0x9d5   : > { %1921 = vmatpush3.bf16.msra.mxu1 %v1215_v49 }
 0x9d6   : > { %1932 = vmatprep.subr.bf16.mxu1 %v2041_v0 }
 0x9d7   : > { %v2008_v50 = vpop.eup %2007 }
 0x9d8   : > { %v1211_v52 = vmul.f32 %v2008_v50, %v2004_v36 }
 0x9db   : > { %v2010_v51 = vpop.eup %2009 }
 0x9dc   : > { %v1212_v53 = vmul.f32 %v2010_v51, %v2006_v38 }
 0x9de   : > { %v1213_v54 = vpack.c.bf16 %v1212_v53, %v1211_v52 }
 0x9e0   : > { %1923 = vmatmul.mubr.msk.bf16.vlgmr.msra.gmra.mrb[24].mxu1 %vm662_vm2, %v1213_v54 }
 0x9e1   : > { %1936 = vmatprep.mubr.msk.bf16.mxu1 %vm2042_vm0, %v2041_v0  ;;  %1933 = vmatpush3.bf16.msra.mxu1 %v1973_v21 }
 0x9e2   : > { %1934 = vmatprep.subr.bf16.mxu1 %v2041_v0 }
 0x9e5   : > { %1935 = vmatpush3.bf16.msra.mxu1 %v1974_v22 }
 0xab3   : > { %v1254_v31 = vpop.f32.mrb[24].mxu1 }
 0xab4   : > { %v1924_v34 = vpop.f32.mrb[25].mxu1 }
 0xab5   : > { %v1257_v55 = vpop.f32.mrb[26].mxu1  ;;  %v1975_v34 = vld [vmem:[%s2396_s15] sm:$0xff]  }
 0xab6   : > { %v1261_v56 = vpack.c.bf16 %v1257_v55, %v1254_v31  ;;  %v1925_v57 = vpop.f32.mrb[27].mxu1 }
 0xab8   : > { %1929 = vmatmul.mubr.msk.bf16.vlgmr.msra.gmra.mrb[16].mxu0 %vm608_vm1, %v1261_v56  ;;  %v1976_v56 = vld [vmem:[%s2396_s15 + $0x8] sm:$0xff]  }
 0xab9   : > { %1948 = vmatprep.mubr.msk.bf16.mxu0 %vm2042_vm0, %v2041_v0  ;;  %1941 = vmatpush3.bf16.msra.mxu0 %v1975_v34 }
 0xaba   : > { %1942 = vmatprep.subr.bf16.mxu0 %v2041_v0 }
 0xabd   : > { %1943 = vmatpush3.bf16.msra.mxu0 %v1976_v56 }
 0xabe   : > { %1944 = vmatprep.subr.bf16.mxu0 %v2041_v0 }
 0xb8b   : > { %v1302_v58 = vpop.f32.mrb[16].mxu0 }
 0xb8c   : > { %v1309_v60 = vadd.f32 %v1302_v58, %v1132_v43  ;;  %v1930_v61 = vpop.f32.mrb[17].mxu0  ;;  %v1977_v58 = vld [vmem:[%s2396_s15 + $0x10] sm:$0xff]  }
 0xb8d   : > { %v1305_v63 = vpop.f32.mrb[18].mxu0  ;;  %1945 = vmatpush3.bf16.msra.mxu0 %v1977_v58  ;;  %v1793_v58 = vld [vmem:[%s2391_s10] ss:$0 sm:$0xff] }
 0xb8e   : > { %v1313_v2 = vadd.f32 %v1311_v59, %v1309_v60  ;;  %v1310_v4 = vadd.f32 %v1305_v63, %v1133_v46  ;;  %v1931_v5 = vpop.f32.mrb[19].mxu0  ;;  %v1978_v59 = vld [vmem:[%s2396_s15 + $0x18] sm:$0xff]   ;;  %1946 = vmatprep.subr.bf16.mxu0 %v2041_v0  ;;  %v1467_v60 = vlaneseq }
 0xb8f   : > { %v1464_v5 = vld [vmem:[%s2390_s9] sm:$0x7f] }
 0xb90   : > { %v2285_v6 = vadd.f32 %v1786_v62, %v1313_v2  ;;  %v1314_v7 = vadd.f32 %v1312_v1, %v1310_v4  ;;  %v2333_v61 = vshrl.u32 %v1467_v60, 7 }
 0xb91   : > { %1947 = vmatpush3.bf16.msra.mxu0 %v1978_v59 }
 0xb92   : > { %v2287_v8 = vadd.f32 %v1786_v62, %v1314_v7  ;;  %v1327_v9 = vsel %vm1326_vm4, %v2285_v6, 0.0  ;;  %v1469_v4 = vsub.s32 0, %v2333_v61  ;;  %v1479_v7 = vsub.s32 1, %v2333_v61 }
 0xb93   : > { %1328 = vadd.xlane.f32.xlu0 %v1327_v9  ;;  %v1489_v0 = vsub.s32 2, %v2333_v61  ;;  %v1553_v9 = vld [vmem:[%s2395_s14] sm:$0x1] }
 0xb94   : > { %v1330_v10 = vsel %vm1326_vm4, %v2287_v8, 0.0 }
 0xb95   : > { %1331 = vadd.xlane.f32.xlu1 %v1330_v10  ;;  %v1470_v10 = vrot.slane %v1464_v5, %v1469_v4 }
 0xc20   : > { %v1329_v11 = vpop.xlane.xlu0 %1328 }
 0xc21   : > { %v1334_v12 = vmul.f32 0.03125, %v1329_v11  ;;  %v1480_v11 = vrot.slane %v1464_v5, %v1479_v7 }
 0xc22   : > { %v1332_v13 = vpop.xlane.xlu1 %1331 }
 0xc23   : > { %v1336_v14 = vsub.f32 %v2285_v6, %v1334_v12  ;;  %v1335_v15 = vmul.f32 0.03125, %v1332_v13  ;;  %v1499_v12 = vsub.s32 3, %v2333_v61  ;;  %v1554_v13 = vadd.f32 1e-05, %v1553_v9  ;;  %v1795_v9 = vld [vmem:[%s2392_s11] ss:$0 sm:$0xff] }
 0xc25   : > { %v1337_v16 = vsub.f32 %v2287_v8, %v1335_v15  ;;  %v1338_v17 = vmul.f32 %v1336_v14, %v1336_v14  ;;  %v1490_v15 = vrot.slane %v1464_v5, %v1489_v0 }
 0xc27   : > { %v1340_v18 = vsel %vm1326_vm4, %v1338_v17, 0.0  ;;  %v1339_v19 = vmul.f32 %v1337_v16, %v1337_v16 }
 0xc28   : > { %1341 = vadd.xlane.f32.xlu1 %v1340_v18 }
 0xc29   : > { %v1343_v20 = vsel %vm1326_vm4, %v1339_v19, 0.0 }
 0xc2c   : > { %1344 = vadd.xlane.f32.xlu1 %v1343_v20  ;;  %v1519_v20 = vsub.s32 5, %v2333_v61 }
 0xcb5   : > { %v1342_v23 = vpop.xlane.xlu1 %1341 }
 0xcb6   : > { %v1346_v24 = vmul.f32 0.03125, %v1342_v23  ;;  %v1500_v23 = vrot.slane %v1464_v5, %v1499_v12  ;;  %v1796_v12 = vld [vmem:[%s2393_s12] ss:$0 sm:$0xff] }
 0xcb8   : > { %v1348_v25 = vadd.f32 1e-05, %v1346_v24 }
 0xcb9   : > { %v1345_v26 = vpop.xlane.xlu1 %1344 }
 0xcba   : > { %2011 = vrsqrt.f32 %v1348_v25  ;;  %v1347_v27 = vmul.f32 0.03125, %v1345_v26 }
 0xcbc   : > { %v1349_v28 = vadd.f32 1e-05, %v1347_v27 }
 0xcbe   : > { %2013 = vrsqrt.f32 %v1349_v28  ;;  %v1529_v28 = vsub.s32 6, %v2333_v61 }
 0xcc4   : > { %v2012_v29 = vpop.eup %2011 }
 0xcc5   : > { %v1352_v30 = vmul.f32 %v2012_v29, %v1336_v14 }
 0xcc7   : > { %v1360_v35 = vmul.f32 %v1787_v32, %v1352_v30 }
 0xcc8   : > { %v2014_v33 = vpop.eup %2013 }
 0xcc9   : > { %v1353_v36 = vmul.f32 %v2014_v33, %v1337_v16  ;;  %v1368_v39 = vadd.f32 %v1788_v37, %v1360_v35  ;;  %v1509_v16 = vsub.s32 4, %v2333_v61 }
 0xccb   : > { %v1361_v38 = vmul.f32 %v1787_v32, %v1353_v36  ;;  %v1510_v33 = vrot.slane %v1464_v5, %v1509_v16 }
 0xccd   : > { %v1369_v40 = vadd.f32 %v1788_v37, %v1361_v38  ;;  %v1520_v37 = vrot.slane %v1464_v5, %v1519_v20 }
 0xccf   : > { %v1374_v41 = vpack.c.bf16 %v1369_v40, %v1368_v39 }
 0xcd1   : > { %1937 = vmatmul.mubr.msk.bf16.vlgmr.msra.gmra.mrb[28].mxu1 %vm1326_vm4, %v1374_v41 }
 0xda4   : > { %v1431_v43 = vpop.f32.mrb[28].mxu1 }
 0xda5   : > { %v1432_v44 = vadd.f32 %v1789_v42, %v1431_v43  ;;  %v1938_v45 = vpop.f32.mrb[29].mxu1 }
 0xda6   : > { %v1434_v46 = vpop.f32.mrb[30].mxu1 }
 0xda7   : > { %v1438_v47 = vsub.f32 0.0, %v1432_v44  ;;  %v1435_v48 = vadd.f32 %v1789_v42, %v1434_v46  ;;  %v1939_v3 = vpop.f32.mrb[31].mxu1 }
 0xda9   : > { %v1440_v49 = vmul.f32 1.442695, %v1438_v47  ;;  %v1439_v50 = vsub.f32 0.0, %v1435_v48 }
 0xdab   : > { %2015 = vpow2.f32 %v1440_v49  ;;  %v1442_v51 = vmul.f32 1.442695, %v1439_v50 }
 0xdad   : > { %2017 = vpow2.f32 %v1442_v51 }
 0xdb5   : > { %v2016_v52 = vpop.eup %2015 }
 0xdb6   : > { %v1444_v53 = vadd.f32 1.0, %v2016_v52 }
 0xdb7   : > { %v2018_v54 = vpop.eup %2017 }
 0xdb8   : > { %2019 = vrcp.f32 %v1444_v53  ;;  %v1445_v31 = vadd.f32 1.0, %v2018_v54 }
 0xdba   : > { %2021 = vrcp.f32 %v1445_v31 }
 0xdbb   : > { %2023 = vrsqrt.f32 %v1554_v13 }
 0xdc2   : > { %v2020_v55 = vpop.eup %2019 }
 0xdc3   : > { %1450 = vrot.lane.b32.xlu1 %v2020_v55, %s2044_s22 }
 0xdc4   : > { %v2022_v57 = vpop.eup %2021 }
 0xdc5   : > { %1452 = vrot.lane.b32.xlu0 %v2022_v57, %s2044_s22  ;;  %v2024_v57 = vpop.eup %2023 }
 0xe35   : > { %v1451_v62 = vpop.permute.xlu1 %1450 }
 0xe36   : > { %v1456_v63 = vmul.f32 %v1451_v62, %v1432_v44  ;;  %v1530_v44 = vrot.slane %v1464_v5, %v1529_v28  ;;  %v1560_v5 = vrot.slane %v2024_v57, %v1469_v4 }
 0xe37   : > { %v1453_v1 = vpop.permute.xlu0 %1452 }
 0xe38   : > { %1461 = vst.msk [vmem:[#allocation2 + $0x3] sm:$0xff] %vm1460_vm6, %v1456_v63  ;;  %v1457_v2 = vmul.f32 %v1453_v1, %v1435_v48  ;;  %v1794_v63 = vld [vmem:[%s2394_s13] ss:$0 sm:$0xff] }
 0xe3a   : > { %1462 = vst.msk [vmem:[#allocation2 + $0xb] sm:$0xff] %vm1460_vm6, %v1457_v2 }
 0xe3f   : > { %v1465_v14 = vld [vmem:[#allocation2] sm:$0xff] }
 0xe40   : > { %v1485_v17 = vld [vmem:[#allocation2 + $0x2] sm:$0xff]  ;;  %v1471_v18 = vmul.f32 %v1470_v10, %v1465_v14 }
 0xe41   : > { %v1475_v19 = vld [vmem:[#allocation2 + $0x1] sm:$0xff]  ;;  %v1486_v25 = vld [vmem:[#allocation2 + $0xa] sm:$0xff]  ;;  %v1491_v32 = vmul.f32 %v1490_v15, %v1485_v17 }
 0xe42   : > { %v1466_v21 = vld [vmem:[#allocation2 + $0x8] sm:$0xff]  ;;  %v1481_v22 = vmul.f32 %v1480_v11, %v1475_v19  ;;  %v1492_v39 = vmul.f32 %v1490_v15, %v1486_v25 }
 0xe43   : > { %v1495_v24 = vld [vmem:[#allocation2 + $0x3] sm:$0xff]  ;;  %v1472_v26 = vmul.f32 %v1470_v10, %v1466_v21  ;;  %v1496_v35 = vld [vmem:[#allocation2 + $0xb] sm:$0xff] }
 0xe44   : > { %v1476_v27 = vld [vmem:[#allocation2 + $0x9] sm:$0xff]  ;;  %v1483_v30 = vadd.f32 %v1481_v22, %v1471_v18  ;;  %v1501_v41 = vmul.f32 %v1500_v23, %v1495_v24  ;;  %v1502_v46 = vmul.f32 %v1500_v23, %v1496_v35 }
 0xe45   : > { %v1482_v29 = vmul.f32 %v1480_v11, %v1476_v27  ;;  %v1505_v36 = vld [vmem:[#allocation2 + $0x4] sm:$0xff]  ;;  %v1506_v42 = vld [vmem:[#allocation2 + $0xc] sm:$0xff] }
 0xe46   : > { %v1493_v40 = vadd.f32 %v1491_v32, %v1483_v30  ;;  %v1515_v43 = vld [vmem:[#allocation2 + $0x5] sm:$0xff]  ;;  %v1511_v48 = vmul.f32 %v1510_v33, %v1505_v36  ;;  %v1516_v3 = vld [vmem:[#allocation2 + $0xd] sm:$0xff]  ;;  %v1512_v51 = vmul.f32 %v1510_v33, %v1506_v42 }
 0xe47   : > { %v1484_v38 = vadd.f32 %v1482_v29, %v1472_v26  ;;  %v1525_v49 = vld [vmem:[#allocation2 + $0x6] sm:$0xff]  ;;  %v1521_v53 = vmul.f32 %v1520_v37, %v1515_v43  ;;  %v1526_v54 = vld [vmem:[#allocation2 + $0xe] sm:$0xff]  ;;  %v1522_v34 = vmul.f32 %v1520_v37, %v1516_v3  ;;  %v1797_v29 = vld [vmem:[%s2397_s16] ss:$0 sm:$0xff] }
 0xe48   : > { %v1503_v47 = vadd.f32 %v1501_v41, %v1493_v40  ;;  %v1531_v56 = vmul.f32 %v1530_v44, %v1525_v49  ;;  %v1532_v60 = vmul.f32 %v1530_v44, %v1526_v54 }
 0xe49   : > { %v1494_v45 = vadd.f32 %v1492_v39, %v1484_v38 }
 0xe4a   : > { %v1513_v52 = vadd.f32 %v1511_v48, %v1503_v47 }
 0xe4b   : > { %v1504_v50 = vadd.f32 %v1502_v46, %v1494_v45 }
 0xe4c   : > { %v1523_v55 = vadd.f32 %v1521_v53, %v1513_v52 }
 0xe4d   : > { %v1514_v31 = vadd.f32 %v1512_v51, %v1504_v50 }
 0xe4e   : > { %v1533_v62 = vadd.f32 %v1531_v56, %v1523_v55 }
 0xe4f   : > { %v1524_v59 = vadd.f32 %v1522_v34, %v1514_v31 }
 0xe50   : > { %v1542_v2 = vadd.f32 %v1793_v58, %v1533_v62 }
 0xe51   : > { %v1534_v1 = vadd.f32 %v1532_v60, %v1524_v59 }
 0xe52   : > { %v1551_v0 = vsub.f32 %v1542_v2, %v1794_v63 }
 0xe53   : > { %v1543_v7 = vadd.f32 %v1793_v58, %v1534_v1 }
 0xe54   : > { %v1562_v11 = vmul.f32 %v1560_v5, %v1551_v0 }
 0xe55   : > { %v1552_v10 = vsub.f32 %v1543_v7, %v1794_v63 }
 0xe56   : > { %v1571_v14 = vmul.f32 %v1795_v9, %v1562_v11 }
 0xe57   : > { %v1563_v13 = vmul.f32 %v1560_v5, %v1552_v10 }
 0xe58   : > { %v1580_v16 = vadd.f32 %v1796_v12, %v1571_v14 }
 0xe59   : > { %v1572_v15 = vmul.f32 %v1795_v9, %v1563_v13 }
 0xe5a   : > { %v1582_v18 = vsub.f32 0.0, %v1580_v16 }
 0xe5b   : > { %v1581_v17 = vadd.f32 %v1796_v12, %v1572_v15 }
 0xe5c   : > { %v1584_v4 = vmul.f32 1.442695, %v1582_v18 }
 0xe5d   : > { %v1583_v61 = vsub.f32 0.0, %v1581_v17 }
 0xe5e   : > { %2025 = vpow2.f32 %v1584_v4 }
 0xe5f   : > { %v1586_v19 = vmul.f32 1.442695, %v1583_v61 }
 0xe61   : > { %2027 = vpow2.f32 %v1586_v19 }
 0xe68   : > { %v2026_v20 = vpop.eup %2025 }
 0xe69   : > { %v1588_v21 = vadd.f32 1.0, %v2026_v20 }
 0xe6b   : > { %v2028_v22 = vpop.eup %2027  ;;  %2029 = vrcp.f32 %v1588_v21 }
 0xe6c   : > { %v1589_v23 = vadd.f32 1.0, %v2028_v22 }
 0xe6e   : > { %2031 = vrcp.f32 %v1589_v23 }
 0xe75   : > { %v2030_v24 = vpop.eup %2029 }
 0xe76   : > { %v1592_v26 = vmul.f32 %v2030_v24, %v1580_v16 }
 0xe78   : > { %v2032_v25 = vpop.eup %2031 }
 0xe79   : > { %v1593_v27 = vmul.f32 %v2032_v25, %v1581_v17 }
 0xe7b   : > { %v1602_v28 = vpack.c.bf16 %v1593_v27, %v1592_v26 }
 0xe7d   : > { %1949 = vmatmul.mubr.msk.bf16.vlgmr.msra.gmra.mrb[20].mxu0 %vm1460_vm6, %v1602_v28 }
 0xf50   : > { %v1671_v30 = vpop.f32.mrb[20].mxu0 }
 0xf51   : > { %v1672_v32 = vadd.f32 %v1797_v29, %v1671_v30  ;;  %v1950_v33 = vpop.f32.mrb[21].mxu0 }
 0xf52   : > { %v1674_v35 = vpop.f32.mrb[22].mxu0 }
 0xf53   : > { %v1678_v36 = vadd.f32 %v1672_v32, %v2285_v6  ;;  %v1675_v37 = vadd.f32 %v1797_v29, %v1674_v35  ;;  %v1951_v38 = vpop.f32.mrb[23].mxu0 }
 0xf55   : > { %1680 = vst.msk [vmem:[%s588_s30] sm:$0xff] %vm1326_vm4, %v1678_v36  ;;  %v1679_v39 = vadd.f32 %v1675_v37, %v2287_v8 }
 0xf57   : > { %1681 = vst.msk [vmem:[%s588_s30 + $0x8] sm:$0xff] %vm1326_vm4, %v1679_v39 }
 0xf58 PF: > { %s27_s24 = sadd.s32 1, %s2039_s24  }
 0xf59   : > { %p24_p4 = scmp.ge.s32.totalorder %s27_s24, 4  }
 0xf5b   :  { %26 = sbr.rel (!%p24_p4) target bundleno = 3 (0x3), region = 124 }

</bundles_post_ra>
